<compile_context>
chip_gen: v6e
topology: v6e:2x2x1
jax: 0.10.0
libtpu: 0.0.40
codegen_flags: <defaults>
</compile_context>

<pallas_src>
import math
import functools

import jax
import jax.numpy as jnp
from jax.experimental import pallas as pl
from jax.experimental.pallas import tpu as pltpu


# --------------------------------- kernel ---------------------------------

def mha_kernel(*refs, n_heads, n_query, graph_size, use_mask):
    if use_mask:
        q_ref, kv_ref, mask_ref, wq_ref, wk_ref, wv_ref, wo_ref, out_ref = refs
    else:
        q_ref, kv_ref, wq_ref, wk_ref, wv_ref, wo_ref, out_ref = refs
        mask_ref = None

    Rq, D = q_ref.shape          # Rq = Bt * n_query   (flattened rows, bf16)
    Rk, _ = kv_ref.shape         # Rk = Bt * graph_size
    H, nq, ns = n_heads, n_query, graph_size
    Bt = Rq // nq
    HKD = wq_ref.shape[1]        # = H * kd (== D for this module)
    kd = HKD // H
    norm = 1.0 / math.sqrt(kd)

    xq = q_ref[...]              # (Rq, D) bf16 — already flattened & bf16 (wrapper)
    xkv = kv_ref[...]            # (Rk, D) bf16

    # ---- fused, full-width projections: 3 MXU matmuls, f32 accumulation ----
    Q = jnp.dot(xq, wq_ref[...], preferred_element_type=jnp.float32)    # (Rq, H*kd)
    K = jnp.dot(xkv, wk_ref[...], preferred_element_type=jnp.float32)   # (Rk, H*kd)
    V = jnp.dot(xkv, wv_ref[...], preferred_element_type=jnp.float32)   # (Rk, H*kd)

    # One leading-dim split + one bf16 cast per slab (3 casts total).
    Q3 = Q.reshape(Bt, nq, HKD).astype(jnp.bfloat16)
    K3 = K.reshape(Bt, ns, HKD).astype(jnp.bfloat16)
    V3 = V.reshape(Bt, ns, HKD).astype(jnp.bfloat16)

    if use_mask:
        masked = mask_ref[...] > 0                      # (Bt, nq, ns) bool

    head_outs = []
    for hh in range(H):                                 # static unroll (H == 8)
        sl = slice(hh * kd, (hh + 1) * kd)              # static lane slice of the fused slabs
        Qh = Q3[:, :, sl]                               # (Bt, nq, kd) bf16
        Kh = K3[:, :, sl]                               # (Bt, ns, kd) bf16
        Vh = V3[:, :, sl]                               # (Bt, ns, kd) bf16

        # Single-batch-dim einsums (Mosaic-safe batched matmul form).
        S = norm * jnp.einsum("bqd,bkd->bqk", Qh, Kh,
                              preferred_element_type=jnp.float32)       # (Bt, nq, ns) f32
        if use_mask:
            # Large finite negative (not -inf): partially masked rows underflow to 0,
            # fully masked rows stay NaN-free.
            S = jnp.where(masked, -1e30, S)

        m = jnp.max(S, axis=-1, keepdims=True)
        p = jnp.exp(S - m)
        if use_mask:
            p = jnp.where(masked, 0.0, p)               # torch: attnc[mask] = 0
        denom = jnp.sum(p, axis=-1, keepdims=True)
        if use_mask:
            denom = jnp.maximum(denom, 1e-30)           # fully-masked row -> attention == 0
        attn = (p * pl.reciprocal(denom, approx=True)).astype(jnp.bfloat16)

        Oh = jnp.einsum("bqk,bkd->bqd", attn, Vh,
                        preferred_element_type=jnp.float32)             # (Bt, nq, kd) f32
        head_outs.append(Oh.reshape(Rq, kd).astype(jnp.bfloat16))

    # Heads slab (rows, H*kd) head-major/kd-minor — matches torch's
    # permute(1,2,0,3).reshape(-1, H*kd) ordering — then ONE K=128 output matmul.
    heads = jnp.concatenate(head_outs, axis=-1)                          # (Rq, H*kd) bf16
    out_ref[...] = jnp.dot(heads, wo_ref[...],
                           preferred_element_type=jnp.float32).astype(out_ref.dtype)


# --------------------------------- wrapper ---------------------------------

def prepare_params(w_query, w_key, w_value, w_out):
    """One-time packing of torch-layout weights into lane-dense bf16 2-D matrices.

    w_query/w_key/w_value: (H, D, kd)  ->  (D, H*kd)   (head-major columns)
    w_out:                 (H, kd, D)  ->  (H*kd, D)   (== torch w_out.view(-1, D))
    """
    H, D, kd = w_query.shape
    pack_in = lambda w: jnp.transpose(w, (1, 0, 2)).reshape(D, H * kd).astype(jnp.bfloat16)
    return dict(
        wq=pack_in(w_query), wk=pack_in(w_key), wv=pack_in(w_value),
        wo=jnp.asarray(w_out).reshape(H * kd, D).astype(jnp.bfloat16),
        n_heads=H, key_dim=kd, embed_dim=D)


def _pick_block_batch(B, nq, ns):
    """Batch block so each grid step feeds ~full MXU M rows, with >=2 grid steps."""
    row_target = 256                                    # v6e / v7x: 256x256 MXU passes
    try:
        kind = jax.devices()[0].device_kind.lower()
        if ("v5 lite" in kind) or ("v5e" in kind) or ("v5lite" in kind):
            row_target = 128                            # v5e: 128x128 MXU
    except Exception:
        pass
    bt = max(1, min(B, row_target // max(nq, 1)))
    if B > 1:
        # Keep at least 2 grid steps so v7x's second TensorCore isn't idle
        # and DMA/compute pipelining has work to overlap.
        bt = min(bt, max(1, (B + 1) // 2))
    # Sublane-aligned row blocks for the flattened 2-D activations.
    while (bt * nq) % 8 or (bt * ns) % 8:
        bt += 1
    return bt


def multi_head_attention(q, h=None, mask=None, *, params, block_batch=None):
    """Forward pass matching the PyTorch MultiHeadAttention module.

    q: (B, n_query, D); h: (B, graph_size, D) or None (self-attention);
    mask: (B, n_query, graph_size) (or viewable as such), 1 == "attention not
    possible"; params: output of prepare_params(...).
    """
    if h is None:
        h = q
    wq, wk, wv, wo = params["wq"], params["wk"], params["wv"], params["wo"]
    H, D = params["n_heads"], params["embed_dim"]

    q = jnp.asarray(q)
    h = jnp.asarray(h)
    B, nq, _ = q.shape
    ns = h.shape[1]

    use_mask = mask is not None
    if use_mask:
        mask = jnp.asarray(mask).reshape(B, -1, ns)     # torch allows 2-D when n_query == 1
        if mask.shape[1] != nq:
            mask = jnp.broadcast_to(mask, (B, nq, ns))
        mask = mask.astype(jnp.int8)                    # 4x smaller mask DMA than f32

    if block_batch is None:
        block_batch = _pick_block_batch(B, nq, ns)
    Bt = int(block_batch)
    n_blocks = int(pl.cdiv(B, Bt))
    Bp = n_blocks * Bt                                  # padded batch (handles prime B)

    # bf16, flattened 2-D activations: lane/sublane-dense DMA, no in-kernel reshape.
    qf = q.astype(jnp.bfloat16).reshape(B * nq, D)
    hf = h.astype(jnp.bfloat16).reshape(B * ns, D)
    if Bp != B:
        qf = jnp.pad(qf, ((0, (Bp - B) * nq), (0, 0)))
        hf = jnp.pad(hf, ((0, (Bp - B) * ns), (0, 0)))
        if use_mask:
            mask = jnp.pad(mask, ((0, Bp - B), (0, 0), (0, 0)))

    rq, rk = Bt * nq, Bt * ns
    row_block = lambda b: (b, 0)
    per_batch3 = lambda b: (b, 0, 0)
    shared2d = lambda b: (0, 0)

    in_specs = [pl.BlockSpec((rq, D), row_block),       # q rows
                pl.BlockSpec((rk, D), row_block)]       # h rows
    inputs = [qf, hf]
    if use_mask:
        in_specs.append(pl.BlockSpec((Bt, nq, ns), per_batch3))
        inputs.append(mask)
    in_specs += [pl.BlockSpec(wq.shape, shared2d),      # (D, H*kd)
                 pl.BlockSpec(wk.shape, shared2d),
                 pl.BlockSpec(wv.shape, shared2d),
                 pl.BlockSpec(wo.shape, shared2d)]      # (H*kd, D)
    inputs += [wq, wk, wv, wo]

    kernel = functools.partial(mha_kernel, n_heads=H, n_query=nq,
                               graph_size=ns, use_mask=use_mask)

    out2 = pl.pallas_call(
        kernel,
        out_shape=jax.ShapeDtypeStruct((Bp * nq, D), jnp.float32),
        grid_spec=pltpu.PrefetchScalarGridSpec(
            num_scalar_prefetch=0,
            grid=(n_blocks,),
            in_specs=in_specs,
            out_specs=pl.BlockSpec((rq, D), row_block)),
        compiler_params=pltpu.CompilerParams(dimension_semantics=("parallel",)),
    )(*inputs)

    out2 = out2[:B * nq] if Bp != B else out2
    return out2.reshape(B, nq, D)


# ------------------ deterministic parameter construction (torch init) ------------------

def make_params(key, embedding_dim, n_heads):
    D = embedding_dim
    kd = D // n_heads
    ks = jax.random.split(key, 4)

    def u(k, shape):
        stdv = 1.0 / math.sqrt(shape[-1])
        return jax.random.uniform(k, shape, jnp.float32, -stdv, stdv)

    w_query = u(ks[0], (n_heads, D, kd))
    w_key = u(ks[1], (n_heads, D, kd))
    w_value = u(ks[2], (n_heads, D, kd))
    w_out = u(ks[3], (n_heads, kd, D))
    return w_query, w_key, w_value, w_out


# ------------------ pure-JAX reference (mirrors the PyTorch forward) ------------------

def mha_ref(q, h, w_query, w_key, w_value, w_out, mask=None):
    B, nq, D = q.shape
    ns = h.shape[1]
    H, _, kd = w_query.shape
    nf = 1.0 / math.sqrt(kd)
    bf = jnp.bfloat16

    qf = q.reshape(-1, D).astype(bf)
    hf = h.reshape(-1, D).astype(bf)
    Q = jnp.matmul(qf, w_query.astype(bf),
                   preferred_element_type=jnp.float32).reshape(H, B, nq, kd)
    K = jnp.matmul(hf, w_key.astype(bf),
                   preferred_element_type=jnp.float32).reshape(H, B, ns, kd)
    V = jnp.matmul(hf, w_value.astype(bf),
                   preferred_element_type=jnp.float32).reshape(H, B, ns, kd)

    U = nf * jnp.matmul(Q.astype(bf), jnp.swapaxes(K, -1, -2).astype(bf),
                        preferred_element_type=jnp.float32)             # (H, B, nq, ns)
    if mask is not None:
        mb = (jnp.asarray(mask).reshape(B, nq, ns) > 0)[None]
        U = jnp.where(mb, -jnp.inf, U)
    A = jax.nn.softmax(U, axis=-1)
    if mask is not None:
        A = jnp.where(mb, 0.0, A)
    heads = jnp.matmul(A.astype(bf), V.astype(bf),
                       preferred_element_type=jnp.float32)              # (H, B, nq, kd)
    heads = jnp.transpose(heads, (1, 2, 0, 3)).reshape(B * nq, H * kd)
    out = jnp.matmul(heads.astype(bf), w_out.reshape(H * kd, D).astype(bf),
                     preferred_element_type=jnp.float32)
    return out.reshape(B, nq, D)


if __name__ == "__main__":
    EMBED, NHEAD = 128, 8
    B, NQ, NS = 2, 8, 16

    root = jax.random.PRNGKey(0)
    kq, kh, kp, km = jax.random.split(root, 4)
    q = jax.random.normal(kq, (B, NQ, EMBED), jnp.float32)
    h = jax.random.normal(kh, (B, NS, EMBED), jnp.float32)
    w_query, w_key, w_value, w_out = make_params(kp, EMBED, NHEAD)
    params = prepare_params(w_query, w_key, w_value, w_out)   # one-time bf16 lane-dense packing

    # 1) cross-attention, mask=None (mask DMA and masking code compiled out entirely)
    out = jax.block_until_ready(multi_head_attention(q, h, None, params=params))
    ref = mha_ref(q, h, w_query, w_key, w_value, w_out, None)
    assert out.shape == (B, NQ, EMBED)
    assert jnp.allclose(out, ref, atol=1e-2, rtol=1e-2), "no-mask mismatch vs reference"

    # 2) masked cross-attention (mask == 1 means "attention not possible")
    mask = (jax.random.uniform(km, (B, NQ, NS)) < 0.25).astype(jnp.float32)
    mask = mask.at[..., 0].set(0.0)  # keep at least one visible key per query row
    out_m = jax.block_until_ready(
        multi_head_attention(q, h, mask, params=params))
    ref_m = mha_ref(q, h, w_query, w_key, w_value, w_out, mask)
    assert jnp.allclose(out_m, ref_m, atol=1e-2, rtol=1e-2), "masked mismatch vs reference"

    # 3) self-attention path (h=None)
    out_s = jax.block_until_ready(
        multi_head_attention(q, None, None, params=params))
    ref_s = mha_ref(q, q, w_query, w_key, w_value, w_out, None)
    assert jnp.allclose(out_s, ref_s, atol=1e-2, rtol=1e-2), "self-attn mismatch vs reference"

    # 4) non-divisible (odd) batch -> exercises the batch-padding path
    q3 = jax.random.normal(jax.random.PRNGKey(1), (3, NQ, EMBED), jnp.float32)
    h3 = jax.random.normal(jax.random.PRNGKey(2), (3, NS, EMBED), jnp.float32)
    out3 = jax.block_until_ready(multi_head_attention(q3, h3, None, params=params))
    ref3 = mha_ref(q3, h3, w_query, w_key, w_value, w_out, None)
    assert out3.shape == (3, NQ, EMBED)
    assert jnp.allclose(out3, ref3, atol=1e-2, rtol=1e-2), "padded-batch mismatch vs reference"

    print("KERNEL_OK")
</pallas_src>

<mosaic_0001>
module attributes {stable_mosaic.version = 11 : i64} {
  func.func @mha_kernel(%arg0: i32, %arg1: memref<8x128xbf16, #tpu.memory_space<vmem>>, %arg2: memref<16x128xbf16, #tpu.memory_space<vmem>>, %arg3: memref<128x128xbf16, #tpu.memory_space<vmem>>, %arg4: memref<128x128xbf16, #tpu.memory_space<vmem>>, %arg5: memref<128x128xbf16, #tpu.memory_space<vmem>>, %arg6: memref<128x128xbf16, #tpu.memory_space<vmem>>, %arg7: memref<8x128xf32, #tpu.memory_space<vmem>>) attributes {dimension_semantics = [#tpu.dimension_semantics<parallel>], iteration_bounds = array<i64: 2>, scalar_prefetch = 0 : i64, scratch_operands = 0 : i64, tpu.core_type = #tpu.core_type<tc>, window_params = [{transform_indices = @transform_0, window_bounds = array<i64: 8, 128>}, {transform_indices = @transform_1, window_bounds = array<i64: 16, 128>}, {pipeline_mode = #tpu.pipeline_mode<synchronous>, transform_indices = @transform_2, window_bounds = array<i64: 128, 128>}, {pipeline_mode = #tpu.pipeline_mode<synchronous>, transform_indices = @transform_3, window_bounds = array<i64: 128, 128>}, {pipeline_mode = #tpu.pipeline_mode<synchronous>, transform_indices = @transform_4, window_bounds = array<i64: 128, 128>}, {pipeline_mode = #tpu.pipeline_mode<synchronous>, transform_indices = @transform_5, window_bounds = array<i64: 128, 128>}, {transform_indices = @transform_6, window_bounds = array<i64: 8, 128>}]} {
    %c0 = arith.constant 0 : index
    %c0_0 = arith.constant 0 : index
    %0 = vector.load %arg1[%c0, %c0_0] : memref<8x128xbf16, #tpu.memory_space<vmem>>, vector<8x128xbf16>
    %c0_1 = arith.constant 0 : index
    %c0_2 = arith.constant 0 : index
    %1 = vector.load %arg2[%c0_1, %c0_2] : memref<16x128xbf16, #tpu.memory_space<vmem>>, vector<16x128xbf16>
    %c0_3 = arith.constant 0 : index
    %c0_4 = arith.constant 0 : index
    %2 = vector.load %arg3[%c0_3, %c0_4] : memref<128x128xbf16, #tpu.memory_space<vmem>>, vector<128x128xbf16>
    %cst = arith.constant dense<0.000000e+00> : vector<8x128xf32>
    %3 = tpu.matmul %0, %2, %cst {dimension_numbers = #tpu.dot_dimension_numbers<[1], [0], [0], [1], [0, 0, 1, 1], [], []>} : vector<8x128xbf16>, vector<128x128xbf16>, vector<8x128xf32> -> vector<8x128xf32>
    %c0_5 = arith.constant 0 : index
    %c0_6 = arith.constant 0 : index
    %4 = vector.load %arg4[%c0_5, %c0_6] : memref<128x128xbf16, #tpu.memory_space<vmem>>, vector<128x128xbf16>
    %cst_7 = arith.constant dense<0.000000e+00> : vector<16x128xf32>
    %5 = tpu.matmul %1, %4, %cst_7 {dimension_numbers = #tpu.dot_dimension_numbers<[1], [0], [0], [1], [0, 0, 1, 1], [], []>} : vector<16x128xbf16>, vector<128x128xbf16>, vector<16x128xf32> -> vector<16x128xf32>
    %c0_8 = arith.constant 0 : index
    %c0_9 = arith.constant 0 : index
    %6 = vector.load %arg5[%c0_8, %c0_9] : memref<128x128xbf16, #tpu.memory_space<vmem>>, vector<128x128xbf16>
    %cst_10 = arith.constant dense<0.000000e+00> : vector<16x128xf32>
    %7 = tpu.matmul %1, %6, %cst_10 {dimension_numbers = #tpu.dot_dimension_numbers<[1], [0], [0], [1], [0, 0, 1, 1], [], []>} : vector<16x128xbf16>, vector<128x128xbf16>, vector<16x128xf32> -> vector<16x128xf32>
    %8 = vector.shape_cast %3 : vector<8x128xf32> to vector<1x8x128xf32>
    %9 = arith.truncf %8 : vector<1x8x128xf32> to vector<1x8x128xbf16>
    %10 = vector.shape_cast %5 : vector<16x128xf32> to vector<1x16x128xf32>
    %11 = arith.truncf %10 : vector<1x16x128xf32> to vector<1x16x128xbf16>
    %12 = vector.shape_cast %7 : vector<16x128xf32> to vector<1x16x128xf32>
    %13 = arith.truncf %12 : vector<1x16x128xf32> to vector<1x16x128xbf16>
    %14 = vector.extract_strided_slice %9 {offsets = [0, 0, 0], sizes = [1, 8, 16], strides = [1, 1, 1]} : vector<1x8x128xbf16> to vector<1x8x16xbf16>
    %15 = vector.extract_strided_slice %11 {offsets = [0, 0, 0], sizes = [1, 16, 16], strides = [1, 1, 1]} : vector<1x16x128xbf16> to vector<1x16x16xbf16>
    %16 = vector.extract_strided_slice %13 {offsets = [0, 0, 0], sizes = [1, 16, 16], strides = [1, 1, 1]} : vector<1x16x128xbf16> to vector<1x16x16xbf16>
    "tpu.trace_start"() <{level = 10 : i32, message = "bqd,bkd->bqk"}> : () -> ()
    %cst_11 = arith.constant dense<0.000000e+00> : vector<1x8x16xf32>
    %17 = tpu.matmul %14, %15, %cst_11 {dimension_numbers = #tpu.dot_dimension_numbers<[2], [2], [1], [1], [0, 0, 0, 1, 1, 1], [0], [0]>} : vector<1x8x16xbf16>, vector<1x16x16xbf16>, vector<1x8x16xf32> -> vector<1x8x16xf32>
    "tpu.trace_stop"() : () -> ()
    %cst_12 = arith.constant 2.500000e-01 : f32
    %18 = vector.broadcast %cst_12 : f32 to vector<1x8x16xf32>
    %19 = arith.mulf %18, %17 : vector<1x8x16xf32>
    %cst_13 = arith.constant dense<0xFF800000> : vector<1x8xf32>
    %20 = vector.multi_reduction <maximumf>, %19, %cst_13 [2] : vector<1x8x16xf32> to vector<1x8xf32>
    %21 = vector.shape_cast %20 : vector<1x8xf32> to vector<1x8x1xf32>
    %22 = vector.broadcast %21 : vector<1x8x1xf32> to vector<1x8x16xf32>
    %23 = arith.subf %19, %22 : vector<1x8x16xf32>
    %24 = math.exp %23 : vector<1x8x16xf32>
    %cst_14 = arith.constant dense<0.000000e+00> : vector<1x8xf32>
    %25 = vector.multi_reduction <add>, %24, %cst_14 [2] : vector<1x8x16xf32> to vector<1x8xf32>
    %26 = vector.shape_cast %25 : vector<1x8xf32> to vector<1x8x1xf32>
    %27 = tpu.reciprocal %26 {approx = true} : vector<1x8x1xf32> -> vector<1x8x1xf32>
    %28 = vector.broadcast %27 : vector<1x8x1xf32> to vector<1x8x16xf32>
    %29 = arith.mulf %24, %28 : vector<1x8x16xf32>
    %30 = arith.truncf %29 : vector<1x8x16xf32> to vector<1x8x16xbf16>
    "tpu.trace_start"() <{level = 10 : i32, message = "bqk,bkd->bqd"}> : () -> ()
    %cst_15 = arith.constant dense<0.000000e+00> : vector<1x8x16xf32>
    %31 = tpu.matmul %30, %16, %cst_15 {dimension_numbers = #tpu.dot_dimension_numbers<[2], [1], [1], [2], [0, 0, 0, 1, 1, 2], [0], [0]>} : vector<1x8x16xbf16>, vector<1x16x16xbf16>, vector<1x8x16xf32> -> vector<1x8x16xf32>
    "tpu.trace_stop"() : () -> ()
    %32 = vector.shape_cast %31 : vector<1x8x16xf32> to vector<8x16xf32>
    %33 = arith.truncf %32 : vector<8x16xf32> to vector<8x16xbf16>
    %34 = vector.extract_strided_slice %9 {offsets = [0, 0, 16], sizes = [1, 8, 16], strides = [1, 1, 1]} : vector<1x8x128xbf16> to vector<1x8x16xbf16>
    %35 = vector.extract_strided_slice %11 {offsets = [0, 0, 16], sizes = [1, 16, 16], strides = [1, 1, 1]} : vector<1x16x128xbf16> to vector<1x16x16xbf16>
    %36 = vector.extract_strided_slice %13 {offsets = [0, 0, 16], sizes = [1, 16, 16], strides = [1, 1, 1]} : vector<1x16x128xbf16> to vector<1x16x16xbf16>
    "tpu.trace_start"() <{level = 10 : i32, message = "bqd,bkd->bqk"}> : () -> ()
    %cst_16 = arith.constant dense<0.000000e+00> : vector<1x8x16xf32>
    %37 = tpu.matmul %34, %35, %cst_16 {dimension_numbers = #tpu.dot_dimension_numbers<[2], [2], [1], [1], [0, 0, 0, 1, 1, 1], [0], [0]>} : vector<1x8x16xbf16>, vector<1x16x16xbf16>, vector<1x8x16xf32> -> vector<1x8x16xf32>
    "tpu.trace_stop"() : () -> ()
    %cst_17 = arith.constant 2.500000e-01 : f32
    %38 = vector.broadcast %cst_17 : f32 to vector<1x8x16xf32>
    %39 = arith.mulf %38, %37 : vector<1x8x16xf32>
    %cst_18 = arith.constant dense<0xFF800000> : vector<1x8xf32>
    %40 = vector.multi_reduction <maximumf>, %39, %cst_18 [2] : vector<1x8x16xf32> to vector<1x8xf32>
    %41 = vector.shape_cast %40 : vector<1x8xf32> to vector<1x8x1xf32>
    %42 = vector.broadcast %41 : vector<1x8x1xf32> to vector<1x8x16xf32>
    %43 = arith.subf %39, %42 : vector<1x8x16xf32>
    %44 = math.exp %43 : vector<1x8x16xf32>
    %cst_19 = arith.constant dense<0.000000e+00> : vector<1x8xf32>
    %45 = vector.multi_reduction <add>, %44, %cst_19 [2] : vector<1x8x16xf32> to vector<1x8xf32>
    %46 = vector.shape_cast %45 : vector<1x8xf32> to vector<1x8x1xf32>
    %47 = tpu.reciprocal %46 {approx = true} : vector<1x8x1xf32> -> vector<1x8x1xf32>
    %48 = vector.broadcast %47 : vector<1x8x1xf32> to vector<1x8x16xf32>
    %49 = arith.mulf %44, %48 : vector<1x8x16xf32>
    %50 = arith.truncf %49 : vector<1x8x16xf32> to vector<1x8x16xbf16>
    "tpu.trace_start"() <{level = 10 : i32, message = "bqk,bkd->bqd"}> : () -> ()
    %cst_20 = arith.constant dense<0.000000e+00> : vector<1x8x16xf32>
    %51 = tpu.matmul %50, %36, %cst_20 {dimension_numbers = #tpu.dot_dimension_numbers<[2], [1], [1], [2], [0, 0, 0, 1, 1, 2], [0], [0]>} : vector<1x8x16xbf16>, vector<1x16x16xbf16>, vector<1x8x16xf32> -> vector<1x8x16xf32>
    "tpu.trace_stop"() : () -> ()
    %52 = vector.shape_cast %51 : vector<1x8x16xf32> to vector<8x16xf32>
    %53 = arith.truncf %52 : vector<8x16xf32> to vector<8x16xbf16>
    %54 = vector.extract_strided_slice %9 {offsets = [0, 0, 32], sizes = [1, 8, 16], strides = [1, 1, 1]} : vector<1x8x128xbf16> to vector<1x8x16xbf16>
    %55 = vector.extract_strided_slice %11 {offsets = [0, 0, 32], sizes = [1, 16, 16], strides = [1, 1, 1]} : vector<1x16x128xbf16> to vector<1x16x16xbf16>
    %56 = vector.extract_strided_slice %13 {offsets = [0, 0, 32], sizes = [1, 16, 16], strides = [1, 1, 1]} : vector<1x16x128xbf16> to vector<1x16x16xbf16>
    "tpu.trace_start"() <{level = 10 : i32, message = "bqd,bkd->bqk"}> : () -> ()
    %cst_21 = arith.constant dense<0.000000e+00> : vector<1x8x16xf32>
    %57 = tpu.matmul %54, %55, %cst_21 {dimension_numbers = #tpu.dot_dimension_numbers<[2], [2], [1], [1], [0, 0, 0, 1, 1, 1], [0], [0]>} : vector<1x8x16xbf16>, vector<1x16x16xbf16>, vector<1x8x16xf32> -> vector<1x8x16xf32>
    "tpu.trace_stop"() : () -> ()
    %cst_22 = arith.constant 2.500000e-01 : f32
    %58 = vector.broadcast %cst_22 : f32 to vector<1x8x16xf32>
    %59 = arith.mulf %58, %57 : vector<1x8x16xf32>
    %cst_23 = arith.constant dense<0xFF800000> : vector<1x8xf32>
    %60 = vector.multi_reduction <maximumf>, %59, %cst_23 [2] : vector<1x8x16xf32> to vector<1x8xf32>
    %61 = vector.shape_cast %60 : vector<1x8xf32> to vector<1x8x1xf32>
    %62 = vector.broadcast %61 : vector<1x8x1xf32> to vector<1x8x16xf32>
    %63 = arith.subf %59, %62 : vector<1x8x16xf32>
    %64 = math.exp %63 : vector<1x8x16xf32>
    %cst_24 = arith.constant dense<0.000000e+00> : vector<1x8xf32>
    %65 = vector.multi_reduction <add>, %64, %cst_24 [2] : vector<1x8x16xf32> to vector<1x8xf32>
    %66 = vector.shape_cast %65 : vector<1x8xf32> to vector<1x8x1xf32>
    %67 = tpu.reciprocal %66 {approx = true} : vector<1x8x1xf32> -> vector<1x8x1xf32>
    %68 = vector.broadcast %67 : vector<1x8x1xf32> to vector<1x8x16xf32>
    %69 = arith.mulf %64, %68 : vector<1x8x16xf32>
    %70 = arith.truncf %69 : vector<1x8x16xf32> to vector<1x8x16xbf16>
    "tpu.trace_start"() <{level = 10 : i32, message = "bqk,bkd->bqd"}> : () -> ()
    %cst_25 = arith.constant dense<0.000000e+00> : vector<1x8x16xf32>
    %71 = tpu.matmul %70, %56, %cst_25 {dimension_numbers = #tpu.dot_dimension_numbers<[2], [1], [1], [2], [0, 0, 0, 1, 1, 2], [0], [0]>} : vector<1x8x16xbf16>, vector<1x16x16xbf16>, vector<1x8x16xf32> -> vector<1x8x16xf32>
    "tpu.trace_stop"() : () -> ()
    %72 = vector.shape_cast %71 : vector<1x8x16xf32> to vector<8x16xf32>
    %73 = arith.truncf %72 : vector<8x16xf32> to vector<8x16xbf16>
    %74 = vector.extract_strided_slice %9 {offsets = [0, 0, 48], sizes = [1, 8, 16], strides = [1, 1, 1]} : vector<1x8x128xbf16> to vector<1x8x16xbf16>
    %75 = vector.extract_strided_slice %11 {offsets = [0, 0, 48], sizes = [1, 16, 16], strides = [1, 1, 1]} : vector<1x16x128xbf16> to vector<1x16x16xbf16>
    %76 = vector.extract_strided_slice %13 {offsets = [0, 0, 48], sizes = [1, 16, 16], strides = [1, 1, 1]} : vector<1x16x128xbf16> to vector<1x16x16xbf16>
    "tpu.trace_start"() <{level = 10 : i32, message = "bqd,bkd->bqk"}> : () -> ()
    %cst_26 = arith.constant dense<0.000000e+00> : vector<1x8x16xf32>
    %77 = tpu.matmul %74, %75, %cst_26 {dimension_numbers = #tpu.dot_dimension_numbers<[2], [2], [1], [1], [0, 0, 0, 1, 1, 1], [0], [0]>} : vector<1x8x16xbf16>, vector<1x16x16xbf16>, vector<1x8x16xf32> -> vector<1x8x16xf32>
    "tpu.trace_stop"() : () -> ()
    %cst_27 = arith.constant 2.500000e-01 : f32
    %78 = vector.broadcast %cst_27 : f32 to vector<1x8x16xf32>
    %79 = arith.mulf %78, %77 : vector<1x8x16xf32>
    %cst_28 = arith.constant dense<0xFF800000> : vector<1x8xf32>
    %80 = vector.multi_reduction <maximumf>, %79, %cst_28 [2] : vector<1x8x16xf32> to vector<1x8xf32>
    %81 = vector.shape_cast %80 : vector<1x8xf32> to vector<1x8x1xf32>
    %82 = vector.broadcast %81 : vector<1x8x1xf32> to vector<1x8x16xf32>
    %83 = arith.subf %79, %82 : vector<1x8x16xf32>
    %84 = math.exp %83 : vector<1x8x16xf32>
    %cst_29 = arith.constant dense<0.000000e+00> : vector<1x8xf32>
    %85 = vector.multi_reduction <add>, %84, %cst_29 [2] : vector<1x8x16xf32> to vector<1x8xf32>
    %86 = vector.shape_cast %85 : vector<1x8xf32> to vector<1x8x1xf32>
    %87 = tpu.reciprocal %86 {approx = true} : vector<1x8x1xf32> -> vector<1x8x1xf32>
    %88 = vector.broadcast %87 : vector<1x8x1xf32> to vector<1x8x16xf32>
    %89 = arith.mulf %84, %88 : vector<1x8x16xf32>
    %90 = arith.truncf %89 : vector<1x8x16xf32> to vector<1x8x16xbf16>
    "tpu.trace_start"() <{level = 10 : i32, message = "bqk,bkd->bqd"}> : () -> ()
    %cst_30 = arith.constant dense<0.000000e+00> : vector<1x8x16xf32>
    %91 = tpu.matmul %90, %76, %cst_30 {dimension_numbers = #tpu.dot_dimension_numbers<[2], [1], [1], [2], [0, 0, 0, 1, 1, 2], [0], [0]>} : vector<1x8x16xbf16>, vector<1x16x16xbf16>, vector<1x8x16xf32> -> vector<1x8x16xf32>
    "tpu.trace_stop"() : () -> ()
    %92 = vector.shape_cast %91 : vector<1x8x16xf32> to vector<8x16xf32>
    %93 = arith.truncf %92 : vector<8x16xf32> to vector<8x16xbf16>
    %94 = vector.extract_strided_slice %9 {offsets = [0, 0, 64], sizes = [1, 8, 16], strides = [1, 1, 1]} : vector<1x8x128xbf16> to vector<1x8x16xbf16>
    %95 = vector.extract_strided_slice %11 {offsets = [0, 0, 64], sizes = [1, 16, 16], strides = [1, 1, 1]} : vector<1x16x128xbf16> to vector<1x16x16xbf16>
    %96 = vector.extract_strided_slice %13 {offsets = [0, 0, 64], sizes = [1, 16, 16], strides = [1, 1, 1]} : vector<1x16x128xbf16> to vector<1x16x16xbf16>
    "tpu.trace_start"() <{level = 10 : i32, message = "bqd,bkd->bqk"}> : () -> ()
    %cst_31 = arith.constant dense<0.000000e+00> : vector<1x8x16xf32>
    %97 = tpu.matmul %94, %95, %cst_31 {dimension_numbers = #tpu.dot_dimension_numbers<[2], [2], [1], [1], [0, 0, 0, 1, 1, 1], [0], [0]>} : vector<1x8x16xbf16>, vector<1x16x16xbf16>, vector<1x8x16xf32> -> vector<1x8x16xf32>
    "tpu.trace_stop"() : () -> ()
    %cst_32 = arith.constant 2.500000e-01 : f32
    %98 = vector.broadcast %cst_32 : f32 to vector<1x8x16xf32>
    %99 = arith.mulf %98, %97 : vector<1x8x16xf32>
    %cst_33 = arith.constant dense<0xFF800000> : vector<1x8xf32>
    %100 = vector.multi_reduction <maximumf>, %99, %cst_33 [2] : vector<1x8x16xf32> to vector<1x8xf32>
    %101 = vector.shape_cast %100 : vector<1x8xf32> to vector<1x8x1xf32>
    %102 = vector.broadcast %101 : vector<1x8x1xf32> to vector<1x8x16xf32>
    %103 = arith.subf %99, %102 : vector<1x8x16xf32>
    %104 = math.exp %103 : vector<1x8x16xf32>
    %cst_34 = arith.constant dense<0.000000e+00> : vector<1x8xf32>
    %105 = vector.multi_reduction <add>, %104, %cst_34 [2] : vector<1x8x16xf32> to vector<1x8xf32>
    %106 = vector.shape_cast %105 : vector<1x8xf32> to vector<1x8x1xf32>
    %107 = tpu.reciprocal %106 {approx = true} : vector<1x8x1xf32> -> vector<1x8x1xf32>
    %108 = vector.broadcast %107 : vector<1x8x1xf32> to vector<1x8x16xf32>
    %109 = arith.mulf %104, %108 : vector<1x8x16xf32>
    %110 = arith.truncf %109 : vector<1x8x16xf32> to vector<1x8x16xbf16>
    "tpu.trace_start"() <{level = 10 : i32, message = "bqk,bkd->bqd"}> : () -> ()
    %cst_35 = arith.constant dense<0.000000e+00> : vector<1x8x16xf32>
    %111 = tpu.matmul %110, %96, %cst_35 {dimension_numbers = #tpu.dot_dimension_numbers<[2], [1], [1], [2], [0, 0, 0, 1, 1, 2], [0], [0]>} : vector<1x8x16xbf16>, vector<1x16x16xbf16>, vector<1x8x16xf32> -> vector<1x8x16xf32>
    "tpu.trace_stop"() : () -> ()
    %112 = vector.shape_cast %111 : vector<1x8x16xf32> to vector<8x16xf32>
    %113 = arith.truncf %112 : vector<8x16xf32> to vector<8x16xbf16>
    %114 = vector.extract_strided_slice %9 {offsets = [0, 0, 80], sizes = [1, 8, 16], strides = [1, 1, 1]} : vector<1x8x128xbf16> to vector<1x8x16xbf16>
    %115 = vector.extract_strided_slice %11 {offsets = [0, 0, 80], sizes = [1, 16, 16], strides = [1, 1, 1]} : vector<1x16x128xbf16> to vector<1x16x16xbf16>
    %116 = vector.extract_strided_slice %13 {offsets = [0, 0, 80], sizes = [1, 16, 16], strides = [1, 1, 1]} : vector<1x16x128xbf16> to vector<1x16x16xbf16>
    "tpu.trace_start"() <{level = 10 : i32, message = "bqd,bkd->bqk"}> : () -> ()
    %cst_36 = arith.constant dense<0.000000e+00> : vector<1x8x16xf32>
    %117 = tpu.matmul %114, %115, %cst_36 {dimension_numbers = #tpu.dot_dimension_numbers<[2], [2], [1], [1], [0, 0, 0, 1, 1, 1], [0], [0]>} : vector<1x8x16xbf16>, vector<1x16x16xbf16>, vector<1x8x16xf32> -> vector<1x8x16xf32>
    "tpu.trace_stop"() : () -> ()
    %cst_37 = arith.constant 2.500000e-01 : f32
    %118 = vector.broadcast %cst_37 : f32 to vector<1x8x16xf32>
    %119 = arith.mulf %118, %117 : vector<1x8x16xf32>
    %cst_38 = arith.constant dense<0xFF800000> : vector<1x8xf32>
    %120 = vector.multi_reduction <maximumf>, %119, %cst_38 [2] : vector<1x8x16xf32> to vector<1x8xf32>
    %121 = vector.shape_cast %120 : vector<1x8xf32> to vector<1x8x1xf32>
    %122 = vector.broadcast %121 : vector<1x8x1xf32> to vector<1x8x16xf32>
    %123 = arith.subf %119, %122 : vector<1x8x16xf32>
    %124 = math.exp %123 : vector<1x8x16xf32>
    %cst_39 = arith.constant dense<0.000000e+00> : vector<1x8xf32>
    %125 = vector.multi_reduction <add>, %124, %cst_39 [2] : vector<1x8x16xf32> to vector<1x8xf32>
    %126 = vector.shape_cast %125 : vector<1x8xf32> to vector<1x8x1xf32>
    %127 = tpu.reciprocal %126 {approx = true} : vector<1x8x1xf32> -> vector<1x8x1xf32>
    %128 = vector.broadcast %127 : vector<1x8x1xf32> to vector<1x8x16xf32>
    %129 = arith.mulf %124, %128 : vector<1x8x16xf32>
    %130 = arith.truncf %129 : vector<1x8x16xf32> to vector<1x8x16xbf16>
    "tpu.trace_start"() <{level = 10 : i32, message = "bqk,bkd->bqd"}> : () -> ()
    %cst_40 = arith.constant dense<0.000000e+00> : vector<1x8x16xf32>
    %131 = tpu.matmul %130, %116, %cst_40 {dimension_numbers = #tpu.dot_dimension_numbers<[2], [1], [1], [2], [0, 0, 0, 1, 1, 2], [0], [0]>} : vector<1x8x16xbf16>, vector<1x16x16xbf16>, vector<1x8x16xf32> -> vector<1x8x16xf32>
    "tpu.trace_stop"() : () -> ()
    %132 = vector.shape_cast %131 : vector<1x8x16xf32> to vector<8x16xf32>
    %133 = arith.truncf %132 : vector<8x16xf32> to vector<8x16xbf16>
    %134 = vector.extract_strided_slice %9 {offsets = [0, 0, 96], sizes = [1, 8, 16], strides = [1, 1, 1]} : vector<1x8x128xbf16> to vector<1x8x16xbf16>
    %135 = vector.extract_strided_slice %11 {offsets = [0, 0, 96], sizes = [1, 16, 16], strides = [1, 1, 1]} : vector<1x16x128xbf16> to vector<1x16x16xbf16>
    %136 = vector.extract_strided_slice %13 {offsets = [0, 0, 96], sizes = [1, 16, 16], strides = [1, 1, 1]} : vector<1x16x128xbf16> to vector<1x16x16xbf16>
    "tpu.trace_start"() <{level = 10 : i32, message = "bqd,bkd->bqk"}> : () -> ()
    %cst_41 = arith.constant dense<0.000000e+00> : vector<1x8x16xf32>
    %137 = tpu.matmul %134, %135, %cst_41 {dimension_numbers = #tpu.dot_dimension_numbers<[2], [2], [1], [1], [0, 0, 0, 1, 1, 1], [0], [0]>} : vector<1x8x16xbf16>, vector<1x16x16xbf16>, vector<1x8x16xf32> -> vector<1x8x16xf32>
    "tpu.trace_stop"() : () -> ()
    %cst_42 = arith.constant 2.500000e-01 : f32
    %138 = vector.broadcast %cst_42 : f32 to vector<1x8x16xf32>
    %139 = arith.mulf %138, %137 : vector<1x8x16xf32>
    %cst_43 = arith.constant dense<0xFF800000> : vector<1x8xf32>
    %140 = vector.multi_reduction <maximumf>, %139, %cst_43 [2] : vector<1x8x16xf32> to vector<1x8xf32>
    %141 = vector.shape_cast %140 : vector<1x8xf32> to vector<1x8x1xf32>
    %142 = vector.broadcast %141 : vector<1x8x1xf32> to vector<1x8x16xf32>
    %143 = arith.subf %139, %142 : vector<1x8x16xf32>
    %144 = math.exp %143 : vector<1x8x16xf32>
    %cst_44 = arith.constant dense<0.000000e+00> : vector<1x8xf32>
    %145 = vector.multi_reduction <add>, %144, %cst_44 [2] : vector<1x8x16xf32> to vector<1x8xf32>
    %146 = vector.shape_cast %145 : vector<1x8xf32> to vector<1x8x1xf32>
    %147 = tpu.reciprocal %146 {approx = true} : vector<1x8x1xf32> -> vector<1x8x1xf32>
    %148 = vector.broadcast %147 : vector<1x8x1xf32> to vector<1x8x16xf32>
    %149 = arith.mulf %144, %148 : vector<1x8x16xf32>
    %150 = arith.truncf %149 : vector<1x8x16xf32> to vector<1x8x16xbf16>
    "tpu.trace_start"() <{level = 10 : i32, message = "bqk,bkd->bqd"}> : () -> ()
    %cst_45 = arith.constant dense<0.000000e+00> : vector<1x8x16xf32>
    %151 = tpu.matmul %150, %136, %cst_45 {dimension_numbers = #tpu.dot_dimension_numbers<[2], [1], [1], [2], [0, 0, 0, 1, 1, 2], [0], [0]>} : vector<1x8x16xbf16>, vector<1x16x16xbf16>, vector<1x8x16xf32> -> vector<1x8x16xf32>
    "tpu.trace_stop"() : () -> ()
    %152 = vector.shape_cast %151 : vector<1x8x16xf32> to vector<8x16xf32>
    %153 = arith.truncf %152 : vector<8x16xf32> to vector<8x16xbf16>
    %154 = vector.extract_strided_slice %9 {offsets = [0, 0, 112], sizes = [1, 8, 16], strides = [1, 1, 1]} : vector<1x8x128xbf16> to vector<1x8x16xbf16>
    %155 = vector.extract_strided_slice %11 {offsets = [0, 0, 112], sizes = [1, 16, 16], strides = [1, 1, 1]} : vector<1x16x128xbf16> to vector<1x16x16xbf16>
    %156 = vector.extract_strided_slice %13 {offsets = [0, 0, 112], sizes = [1, 16, 16], strides = [1, 1, 1]} : vector<1x16x128xbf16> to vector<1x16x16xbf16>
    "tpu.trace_start"() <{level = 10 : i32, message = "bqd,bkd->bqk"}> : () -> ()
    %cst_46 = arith.constant dense<0.000000e+00> : vector<1x8x16xf32>
    %157 = tpu.matmul %154, %155, %cst_46 {dimension_numbers = #tpu.dot_dimension_numbers<[2], [2], [1], [1], [0, 0, 0, 1, 1, 1], [0], [0]>} : vector<1x8x16xbf16>, vector<1x16x16xbf16>, vector<1x8x16xf32> -> vector<1x8x16xf32>
    "tpu.trace_stop"() : () -> ()
    %cst_47 = arith.constant 2.500000e-01 : f32
    %158 = vector.broadcast %cst_47 : f32 to vector<1x8x16xf32>
    %159 = arith.mulf %158, %157 : vector<1x8x16xf32>
    %cst_48 = arith.constant dense<0xFF800000> : vector<1x8xf32>
    %160 = vector.multi_reduction <maximumf>, %159, %cst_48 [2] : vector<1x8x16xf32> to vector<1x8xf32>
    %161 = vector.shape_cast %160 : vector<1x8xf32> to vector<1x8x1xf32>
    %162 = vector.broadcast %161 : vector<1x8x1xf32> to vector<1x8x16xf32>
    %163 = arith.subf %159, %162 : vector<1x8x16xf32>
    %164 = math.exp %163 : vector<1x8x16xf32>
    %cst_49 = arith.constant dense<0.000000e+00> : vector<1x8xf32>
    %165 = vector.multi_reduction <add>, %164, %cst_49 [2] : vector<1x8x16xf32> to vector<1x8xf32>
    %166 = vector.shape_cast %165 : vector<1x8xf32> to vector<1x8x1xf32>
    %167 = tpu.reciprocal %166 {approx = true} : vector<1x8x1xf32> -> vector<1x8x1xf32>
    %168 = vector.broadcast %167 : vector<1x8x1xf32> to vector<1x8x16xf32>
    %169 = arith.mulf %164, %168 : vector<1x8x16xf32>
    %170 = arith.truncf %169 : vector<1x8x16xf32> to vector<1x8x16xbf16>
    "tpu.trace_start"() <{level = 10 : i32, message = "bqk,bkd->bqd"}> : () -> ()
    %cst_50 = arith.constant dense<0.000000e+00> : vector<1x8x16xf32>
    %171 = tpu.matmul %170, %156, %cst_50 {dimension_numbers = #tpu.dot_dimension_numbers<[2], [1], [1], [2], [0, 0, 0, 1, 1, 2], [0], [0]>} : vector<1x8x16xbf16>, vector<1x16x16xbf16>, vector<1x8x16xf32> -> vector<1x8x16xf32>
    "tpu.trace_stop"() : () -> ()
    %172 = vector.shape_cast %171 : vector<1x8x16xf32> to vector<8x16xf32>
    %173 = arith.truncf %172 : vector<8x16xf32> to vector<8x16xbf16>
    %174 = tpu.concatenate %33, %53, %73, %93, %113, %133, %153, %173 in 1 : vector<8x16xbf16>, vector<8x16xbf16>, vector<8x16xbf16>, vector<8x16xbf16>, vector<8x16xbf16>, vector<8x16xbf16>, vector<8x16xbf16>, vector<8x16xbf16> -> vector<8x128xbf16>
    %c0_51 = arith.constant 0 : index
    %c0_52 = arith.constant 0 : index
    %175 = vector.load %arg6[%c0_51, %c0_52] : memref<128x128xbf16, #tpu.memory_space<vmem>>, vector<128x128xbf16>
    %cst_53 = arith.constant dense<0.000000e+00> : vector<8x128xf32>
    %176 = tpu.matmul %174, %175, %cst_53 {dimension_numbers = #tpu.dot_dimension_numbers<[1], [0], [0], [1], [0, 0, 1, 1], [], []>} : vector<8x128xbf16>, vector<128x128xbf16>, vector<8x128xf32> -> vector<8x128xf32>
    %c0_54 = arith.constant 0 : index
    %c0_55 = arith.constant 0 : index
    %177 = vector.load %arg7[%c0_54, %c0_55] : memref<8x128xf32, #tpu.memory_space<vmem>>, vector<8x128xf32>
    tpu.vector_store %arg7[%c0_54, %c0_55], %176 {strides = array<i32>} : memref<8x128xf32, #tpu.memory_space<vmem>>, vector<8x128xf32>,
    return
  }
  func.func @transform_0(%arg0: i32) -> (i32, i32) {
    %c0_i32 = arith.constant 0 : i32
    %c0_i32_0 = arith.constant 0 : i32
    return %arg0, %c0_i32 : i32, i32
  }
  func.func @transform_1(%arg0: i32) -> (i32, i32) {
    %c0_i32 = arith.constant 0 : i32
    %c0_i32_0 = arith.constant 0 : i32
    return %arg0, %c0_i32 : i32, i32
  }
  func.func @transform_2(%arg0: i32) -> (i32, i32) {
    %c0_i32 = arith.constant 0 : i32
    %c0_i32_0 = arith.constant 0 : i32
    %c0_i32_1 = arith.constant 0 : i32
    return %c0_i32, %c0_i32_0 : i32, i32
  }
  func.func @transform_3(%arg0: i32) -> (i32, i32) {
    %c0_i32 = arith.constant 0 : i32
    %c0_i32_0 = arith.constant 0 : i32
    %c0_i32_1 = arith.constant 0 : i32
    return %c0_i32, %c0_i32_0 : i32, i32
  }
  func.func @transform_4(%arg0: i32) -> (i32, i32) {
    %c0_i32 = arith.constant 0 : i32
    %c0_i32_0 = arith.constant 0 : i32
    %c0_i32_1 = arith.constant 0 : i32
    return %c0_i32, %c0_i32_0 : i32, i32
  }
  func.func @transform_5(%arg0: i32) -> (i32, i32) {
    %c0_i32 = arith.constant 0 : i32
    %c0_i32_0 = arith.constant 0 : i32
    %c0_i32_1 = arith.constant 0 : i32
    return %c0_i32, %c0_i32_0 : i32, i32
  }
  func.func @transform_6(%arg0: i32) -> (i32, i32) {
    %c0_i32 = arith.constant 0 : i32
    %c0_i32_0 = arith.constant 0 : i32
    return %arg0, %c0_i32 : i32, i32
  }
}

</mosaic_0001>

<bundles_post_ra>
// kernel: tpu_custom_call.1
= control target key start
LH: loop header
LB: loop body
LE: loop exit
PB: predicated region body
PF: predicated region fallthrough
CT: control target
= control target key end

     0   :  { %s3145_s0 = inlined_call_operand.hbm [shape: bf16[16,128], index: 0, kind: input, shape index: {}]   ;;  %s3146_s1 = inlined_call_operand.hbm [shape: bf16[32,128], index: 1, kind: input, shape index: {}]   ;;  %s3147_s2 = inlined_call_operand.hbm [shape: bf16[128,128], index: 2, kind: input, shape index: {}]   ;;  %s3148_s3 = inlined_call_operand.hbm [shape: bf16[128,128], index: 3, kind: input, shape index: {}]   ;;  %s3149_s4 = inlined_call_operand.hbm [shape: bf16[128,128], index: 4, kind: input, shape index: {}]   ;;  %s3150_s5 = inlined_call_operand.hbm [shape: bf16[128,128], index: 5, kind: input, shape index: {}]   ;;  %s3151_s6 = inlined_call_operand.hbm [shape: f32[16,128], index: 6, kind: output, shape index: {}]  }
   0x1   :  { %3157 = sst [smem:[#allocation20_spill]] %s3145_s0 }
   0x2   :  { %3158 = sst [smem:[#allocation21_spill]] %s3147_s2 }
   0x3   :  { %11 = vsyncpa [#allocation3], 0 }
   0x4   :  { %13 = vsyncpa [#allocation3 + $0x1], 0 }
   0x5   :  { %14 = vsyncpa [#allocation6], 0 }
   0x6   :  { %16 = vsyncpa [#allocation6 + $0x1], 0 }
   0x7   :  { %17 = vsyncpa [#allocation9], 0 }
   0x8   :  { %18 = vsyncpa [#allocation12], 0 }
   0x9   :  { %19 = vsyncpa [#allocation4], 0 }
   0xa   :  { %21 = vsyncpa [#allocation4 + $0x1], 0  ;;  %s2644_s21 = smov 0   ;;  %s2646_s22 = smov 0  }
   0xb   :  { %s2648_s23 = smov 0   ;;  %s2650_s24 = smov 0  }
   0xc LB: > { %s2591_s25 = smov [#allocation7]   ;;  %s2665_s27 = sadd.s32 4294967295, %s2589_s24   ;;  %s2589_s24 = sphi %s2650_s24, %s3185_s24   ;;  %s2585_s23 = sphi %s2648_s23, %s3184_s23   ;;  %s2581_s22 = sphi %s2646_s22, %s3183_s22   ;;  %s2577_s21 = sphi %s2644_s21, %s3182_s21  }
   0xd   : > { %s206_s26 = sshll.u32 %s2591_s25, 4  ;;  %p1864_p0 = scmp.ge.s32.totalorder %s2589_s24, 1  ;;  %s207_s26 = int_to_ptr.vmem [resolvable:$true] %s206_s26 }
   0xe   : > { %p3154_p1 = scmp.eq.s32.totalorder %s2665_s27, 0  ;;  %p194_p2 = scmp.lt.s32.totalorder %s2589_s24, 3 }
   0xf   : > { %s2592_s29 = smov [#allocation8]   ;;  %s2593_s8 = smov [#allocation10]  }
  0x10   : > { %p2670_p3 = pnand %p1864_p0, %p194_p2  ;;  %s219_s30 = sshll.u32 %s2592_s29, 4  ;;  %s2683_s30 = int_to_ptr.vmem [resolvable:$true] %s219_s30 }
  0x11   : > { %s232_s9 = sshll.u32 %s2593_s8, 4  ;;  %s2360_s10 = scalar_lea.vmem %s207_s26, 1024  ;;  %s2685_s9 = int_to_ptr.vmem [resolvable:$true] %s232_s9 }
  0x12   : > { %p2203_p5 = pneg %p2670_p3  ;;  %p2361_p8 = scmp.ne.s32.totalorder %s207_s26, %s2360_s10 }
  0x13   : > { %p2368_p11 = scmp.lt.s32.totalorder %s207_s26, %s207_s26  ;;  %p2369_p12 = scmp.lt.s32.totalorder %s2360_s10, %s2360_s10 }
  0x14   : > { %p2679_p6 = pnand %p2203_p5, %p3154_p1 }
  0x15   : > { %p2370_p13 = por %p2369_p12, %p2368_p11 }
  0x16   : > { %p2351_p7 = pneg %p2679_p6 }
  0x18   : > { %p2363_p9 = pnand %p2361_p8, %p2351_p7 }
  0x1a   : > { %p2364_p10 = pneg %p2363_p9 }
  0x1c   : > { %p2371_p0 = pnand %p2370_p13, %p2364_p10 }
  0x1e   : > { %2374 = shalt.err (!%p2371_p0)
}
  0x1f   : > { %s3152_s11 = smov 64   ;;  %s3153_s12 = smov 4  }
  0x20   : > { %s3161_s2 = sld [smem:[#allocation21_spill]]  ;;  %s2386_s15 = scalar_lea.vmem %s2683_s30, 1024 }
  0x21   : > { %p2387_p2 = scmp.ne.s32.totalorder %s2683_s30, %s2386_s15  ;;  %p2394_p9 = scmp.lt.s32.totalorder %s2683_s30, %s2683_s30 }
  0x22   : > { %p2395_p10 = scmp.lt.s32.totalorder %s2386_s15, %s2386_s15 }
  0x23   : > { %p2389_p5 = pnand %p2387_p2, %p2351_p7 }
  0x24   : > { %p2396_p11 = por %p2395_p10, %p2394_p9 }
  0x25   : > { %p2390_p8 = pneg %p2389_p5 }
  0x26   : > { %2206 = dma.hbm_to_vmem [thread:$0]  (!%p2679_p6), %s3161_s2, 1024, %s207_s26, [#allocation6], %s3152_s11, %s3152_s11, %s3153_s12  }
  0x27   : > { %p2397_p12 = pnand %p2396_p11, %p2390_p8 }
  0x29   : > { %2400 = shalt.err (!%p2397_p12)
}
  0x2a   : > { %2209 = dma.hbm_to_vmem [thread:$0]  (!%p2679_p6), %s3148_s3, 1024, %s2683_s30, [#allocation9], %s3152_s11, %s3152_s11, %s3153_s12  }
  0x2b   : > { %s2412_s18 = scalar_lea.vmem %s2685_s9, 1024  ;;  %p2420_p5 = scmp.lt.s32.totalorder %s2685_s9, %s2685_s9 }
  0x2c   : > { %p2413_p13 = scmp.ne.s32.totalorder %s2685_s9, %s2412_s18  ;;  %p2421_p8 = scmp.lt.s32.totalorder %s2412_s18, %s2412_s18 }
  0x2e   : > { %p2415_p0 = pnand %p2413_p13, %p2351_p7  ;;  %p2422_p9 = por %p2421_p8, %p2420_p5 }
  0x30   : > { %p2416_p2 = pneg %p2415_p0 }
  0x32   : > { %p2423_p10 = pnand %p2422_p9, %p2416_p2 }
  0x34   : > { %2426 = shalt.err (!%p2423_p10)
}
  0x35   : > { %2212 = dma.hbm_to_vmem [thread:$0]  (!%p2679_p6), %s3149_s4, 1024, %s2685_s9, [#allocation9], %s3152_s11, %s3152_s11, %s3153_s12  }
  0x36   : > { %s2596_s25 = smov [#allocation11]  }
  0x37   : > { %s245_s26 = sshll.u32 %s2596_s25, 4  ;;  %s246_s26 = int_to_ptr.vmem [resolvable:$true] %s245_s26 }
  0x38   : > { %s2438_s29 = scalar_lea.vmem %s246_s26, 1024  ;;  %p2446_p0 = scmp.lt.s32.totalorder %s246_s26, %s246_s26 }
  0x39   : > { %p2439_p11 = scmp.ne.s32.totalorder %s246_s26, %s2438_s29  ;;  %p2447_p2 = scmp.lt.s32.totalorder %s2438_s29, %s2438_s29 }
  0x3b   : > { %p2441_p12 = pnand %p2439_p11, %p2351_p7  ;;  %p2448_p5 = por %p2447_p2, %p2446_p0 }
  0x3d   : > { %p2442_p13 = pneg %p2441_p12 }
  0x3f   : > { %p2449_p8 = pnand %p2448_p5, %p2442_p13 }
  0x41   : > { %2452 = shalt.err (!%p2449_p8)
}
  0x42   : > { %2215 = dma.hbm_to_vmem [thread:$0]  (!%p2679_p6), %s3150_s5, 1024, %s246_s26, [#allocation12], %s3152_s11, %s3152_s11, %s3153_s12  }
  0x43   : > { %s1863_s7 = sadd.s32 4294967294, %s2589_s24   ;;  %s2745_s9 = sadd.s32 1, %s2589_s24  }
  0x44   : > { %s31_s10 = ssub.s32 %s2589_s24, %s2745_s9  ;;  %s34_s13 = sadd.s32 1, %s2585_s23 }
  0x45   : > { %p32_p7 = scmp.eq.s32.totalorder %s31_s10, 0  ;;  %p41_p9 = scmp.ne.s32.totalorder %s2585_s23, %s2581_s22 }
  0x46   : > { %p42_p10 = scmp.eq.s32.totalorder %s2589_s24, 0  ;;  %p47_p11 = scmp.ne.s32.totalorder %s2581_s22, %s2577_s21 }
  0x47   : > { %s2756_s14 = scalar_select %p32_p7, %s2585_s23, %s34_s13  }
  0x48   : > { %p2758_p12 = por %p42_p10, %p41_p9  ;;  %p2764_p6 = por %p3154_p1, %p47_p11 }
  0x49   : > { %p181_p13 = scmp.eq.s32.totalorder %s2665_s27, 1  ;;  %p187_p0 = scmp.eq.s32.totalorder %s1863_s7, 1 }
  0x4a   : > { %s3163_s16 = scalar_select %p2764_p6, 1, 0 }
  0x4b   : > { %p2231_p2 = scmp.lt.s32.totalorder %s2589_s24, 2  ;;  %s2771_s17 = sand.u32 1, %s2585_s23  }
  0x4c   : > { %p2773_p5 = por %p181_p13, %p41_p9  ;;  %p2777_p8 = por %p187_p0, %p47_p11 }
  0x4d   : > { %s1870_s20 = sshll.u32 %s2771_s17, 2  ;;  %s1871_s25 = sshll.u32 %s2589_s24, 6 }
  0x4e   : > { %s3164_s18 = scalar_select %p2773_p5, 1, 0 }
  0x4f   : > { %s3165_s19 = scalar_select %p2777_p8, 1, 0 }
  0x50   : > { %s3166_s0 = sld [smem:[#allocation20_spill]]  ;;  %s263_s8 = scalar_lea.vmem [#allocation2], %s1870_s20 }
  0x51   : > { %s270_s7 = sshll.u32 %s263_s8, 4  ;;  %p2792_p7 = pnand %p2231_p2, %p2758_p12  ;;  %s2788_s7 = int_to_ptr.vmem [resolvable:$true] %s270_s7 }
  0x52   : > { %s260_s12 = scalar_lea.sflag [#allocation3], %s2771_s17 }
  0x53   : > { %p2455_p10 = pneg %p2792_p7 }
  0x56   : > { %s2786_s30 = scalar_lea.hbm %s3166_s0, %s1871_s25  ;;  %s2458_s15 = scalar_lea.hbm %s3166_s0, 128 }
  0x57   : > { %s2453_s26 = scalar_lea.hbm %s2786_s30, 64  ;;  %p2459_p12 = scmp.lt.s32.totalorder %s2786_s30, %s3166_s0 }
  0x58   : > { %p2454_p9 = scmp.ne.s32.totalorder %s2786_s30, %s2453_s26  ;;  %p2460_p0 = scmp.lt.s32.totalorder %s2458_s15, %s2453_s26 }
  0x5a   : > { %p2456_p11 = pnand %p2455_p10, %p2454_p9  ;;  %p2461_p2 = por %p2460_p0, %p2459_p12 }
  0x5c   : > { %p2457_p13 = pneg %p2456_p11 }
  0x5e   : > { %p2462_p4 = pnand %p2461_p2, %p2457_p13 }
  0x60   : > { %2465 = shalt.err (!%p2462_p4)
}
  0x61   : > { %s2466_s11 = scalar_lea.vmem %s2788_s7, 64  ;;  %s2597_s20 = smov [#allocation2]  }
  0x62   : > { %p2467_p1 = scmp.ne.s32.totalorder %s2788_s7, %s2466_s11  ;;  %s2471_s25 = sshll.u32 %s2597_s20, 4  ;;  %s2472_s25 = int_to_ptr.vmem [resolvable:$false] %s2471_s25 }
  0x63   : > { %s2473_s13 = scalar_lea.vmem %s2472_s25, 128  ;;  %p2474_p8 = scmp.lt.s32.totalorder %s2788_s7, %s2472_s25 }
  0x64   : > { %p2469_p9 = pnand %p2467_p1, %p2455_p10  ;;  %p2475_p5 = scmp.lt.s32.totalorder %s2473_s13, %s2466_s11 }
  0x66   : > { %p2470_p11 = pneg %p2469_p9  ;;  %p2476_p6 = por %p2475_p5, %p2474_p8 }
  0x68   : > { %p2477_p12 = pnand %p2476_p6, %p2470_p11 }
  0x6a   : > { %2480 = shalt.err (!%p2477_p12)
}
  0x6b   : > { %2219 = dma.hbm_to_vmem [thread:$0]  (!%p2792_p7), %s2786_s30, 64, %s2788_s7, %s260_s12  }
  0x6c   : > { %s3168_s26 = sshll.u32 %s2771_s17, 3  ;;  %s1936_s8 = sshll.u32 %s2589_s24, 7 }
  0x6d   : > { %s281_s15 = scalar_lea.vmem [#allocation5], %s3168_s26  ;;  %s2831_s13 = scalar_lea.hbm %s3146_s1, %s1936_s8 }
  0x6e   : > { %s288_s29 = sshll.u32 %s281_s15, 4  ;;  %s3169_s25 = sand.u32 1, %s2589_s24   ;;  %s2825_s29 = int_to_ptr.vmem [resolvable:$true] %s288_s29 }
  0x6f   : > { %s278_s0 = scalar_lea.sflag [#allocation6], %s3169_s25  ;;  %s2481_s2 = scalar_lea.hbm %s2831_s13, 128 }
  0x70   : > { %p2482_p1 = scmp.ne.s32.totalorder %s2831_s13, %s2481_s2  ;;  %s2486_s30 = scalar_lea.hbm %s3146_s1, 256 }
  0x71   : > { %p2487_p5 = scmp.lt.s32.totalorder %s2831_s13, %s3146_s1  ;;  %p2488_p8 = scmp.lt.s32.totalorder %s2486_s30, %s2481_s2 }
  0x72   : > { %p2484_p4 = pnand %p2482_p1, %p2455_p10 }
  0x73   : > { %p2489_p13 = por %p2488_p8, %p2487_p5 }
  0x74   : > { %p2485_p6 = pneg %p2484_p4 }
  0x76   : > { %p2490_p0 = pnand %p2489_p13, %p2485_p6 }
  0x78   : > { %2493 = shalt.err (!%p2490_p0)
}
  0x79   : > { %s2494_s15 = scalar_lea.vmem %s2825_s29, 128  ;;  %s2598_s8 = smov [#allocation5]  }
  0x7a   : > { %p2495_p2 = scmp.ne.s32.totalorder %s2825_s29, %s2494_s15  ;;  %s2499_s20 = sshll.u32 %s2598_s8, 4  ;;  %s2500_s20 = int_to_ptr.vmem [resolvable:$false] %s2499_s20 }
  0x7b   : > { %s2501_s11 = scalar_lea.vmem %s2500_s20, 256  ;;  %p2502_p12 = scmp.lt.s32.totalorder %s2825_s29, %s2500_s20 }
  0x7c   : > { %p2497_p9 = pnand %p2495_p2, %p2455_p10  ;;  %p2503_p1 = scmp.lt.s32.totalorder %s2501_s11, %s2494_s15 }
  0x7e   : > { %p2498_p11 = pneg %p2497_p9  ;;  %p2504_p4 = por %p2503_p1, %p2502_p12 }
  0x80   : > { %p2505_p5 = pnand %p2504_p4, %p2498_p11 }
  0x82   : > { %2508 = shalt.err (!%p2505_p5)
}
  0x83   : > { %s3170_s2 = smov 4   ;;  %s3171_s25 = smov 64  }
  0x84   : > { %2222 = dma.hbm_to_vmem [thread:$0]  (!%p2792_p7), %s2831_s13, 128, %s2825_s29, %s278_s0, %s3171_s25, %s3171_s25, %s3170_s2  }
  0x85   : > { %300 = sbr.rel (%p2670_p3) target bundleno = 3006 (0xbbe), region = 44  ;;  %s2863_s12 = sand.u32 (!%p2670_p3), 1, %s2581_s22  }
  0x86   : > { %s1876_s17 = sshll.u32 (!%p2670_p3), %s2863_s12, 2  ;;  %s303_s30 = scalar_lea.sflag (!%p2670_p3), [#allocation3], %s2863_s12 }
  0x87   : > { %s2867_s7 = scalar_lea.vmem (!%p2670_p3), [#allocation2], %s1876_s17  ;;  %p3172_p10 = scmp.ne.s32.totalorder (!%p2670_p3), %s3163_s16, 0 }
  0x8a   : > { %2552 = dma.done.wait (%p3172_p10), %s303_s30, 64  }
  0x8b   : > { %2554 = vsyncadd (%p3172_p10), %s303_s30, 4294967232  ;;  %s311_s0 = sand.u32 1, %s2665_s27   ;;  %s1877_s28 = sshll.u32 %s2863_s12, 3 }
  0x8c   : > { %s312_s10 = scalar_lea.sflag [#allocation6], %s311_s0  ;;  %s2877_s29 = scalar_lea.vmem [#allocation5], %s1877_s28 }
  0x8d   : > { %2556 = dma.done.wait (%p3172_p10), %s312_s10, 128  }
  0x8e   : > { %2558 = vsyncadd (%p3172_p10), %s312_s10, 4294967168  ;;  %p3173_p3 = scmp.eq.s32.totalorder %s2665_s27, 0 }
  0x90   : > { %2560 = dma.done.wait (%p3173_p3), [#allocation6], 1024   ;;  %p3174_p7 = pmov %p3173_p3 }
  0x91   : > { %p3175_p6 = pmov %p3173_p3 }
  0x92   : > { %2562 = vsyncadd (%p3174_p7), [#allocation6], 4294966272 }
  0x93   : > { %2564 = dma.done.wait (%p3175_p6), [#allocation9], 2048   ;;  %p3176_p8 = pmov %p3173_p3 }
  0x94   : > { %p3177_p13 = pmov %p3173_p3 }
  0x95   : > { %2566 = vsyncadd (%p3176_p8), [#allocation9], 4294965248 }
  0x96   : > { %2568 = dma.done.wait (%p3177_p13), [#allocation12], 1024   ;;  %p3178_p0 = pmov %p3173_p3 }
  0x97   : > { %v2599_v0 = vmov 0.0   ;;  %vm2600_vm0 = vmmov 0   ;;  %v2284_v1 = vld [vmem:[#allocation8 + $0x38] sm:$0xff]   ;;  %v2285_v2 = vld [vmem:[#allocation8 + $0x30] sm:$0xff]   ;;  %v2287_v5 = vld [vmem:[#allocation8 + $0x28] sm:$0xff]   ;;  %vm693_vm1 = vcmask 130048  }
  0x98   : > { %2570 = vsyncadd (%p3178_p0), [#allocation12], 4294966272  ;;  %2025 = vmatprep.subr.bf16.mxu1 %v2599_v0  ;;  %2005 = vmatprep.subr.bf16.mxu0 %v2599_v0  ;;  %v2286_v3 = vld [vmem:[#allocation7 + $0x38] sm:$0xff]   ;;  %v2288_v4 = vld [vmem:[#allocation7 + $0x30] sm:$0xff]   ;;  %s2601_s16 = smov 112   ;;  %s2602_s13 = smov 96  }
  0x99   : > { %2041 = vmatprep.mubr.msk.bf16.mxu1 %vm2600_vm0, %v2599_v0  ;;  %2021 = vmatprep.mubr.msk.bf16.mxu0 %vm2600_vm0, %v2599_v0  ;;  %v2290_v6 = vld [vmem:[#allocation7 + $0x28] sm:$0xff]   ;;  %v2289_v7 = vld [vmem:[#allocation8 + $0x20] sm:$0xff]   ;;  %v2291_v9 = vld [vmem:[#allocation8 + $0x18] sm:$0xff]   ;;  %s2603_s26 = smov 64   ;;  %s2604_s15 = smov 16   ;;  %vm1594_vm2 = vcmask 261120  }
  0x9a   : > { %2026 = vmatpush3.bf16.msra.mxu1 %v2284_v1  ;;  %2006 = vmatpush3.bf16.msra.mxu0 %v2286_v3  ;;  %v2292_v8 = vld [vmem:[#allocation7 + $0x20] sm:$0xff]   ;;  %v2294_v10 = vld [vmem:[#allocation7 + $0x18] sm:$0xff]   ;;  %v2293_v11 = vld [vmem:[#allocation8 + $0x10] sm:$0xff]   ;;  %s2605_s8 = smov 80   ;;  %s2606_s20 = smov 48   ;;  %vm1597_vm3 = vcmask 392192  }
  0x9b   : > { %2027 = vmatprep.subr.bf16.mxu1 %v2599_v0  ;;  %2007 = vmatprep.subr.bf16.mxu0 %v2599_v0  ;;  %v2296_v12 = vld [vmem:[#allocation7 + $0x10] sm:$0xff]   ;;  %v2295_v13 = vld [vmem:[#allocation8 + $0x8] sm:$0xff]   ;;  %v2297_v15 = vld [vmem:[#allocation8] sm:$0xff]   ;;  %s2607_s11 = smov 32   ;;  %vm1600_vm4 = vcmask 523264   ;;  %vm1603_vm5 = vcmask 654336  }
  0x9c   : > { %v2298_v14 = vld [vmem:[#allocation7 + $0x8] sm:$0xff]   ;;  %v2300_v16 = vld [vmem:[#allocation7] sm:$0xff]   ;;  %v2299_v17 = vld [vmem:[%s2877_s29] sm:$0xff]   ;;  %vm1606_vm6 = vcmask 785408   ;;  %vm1609_vm7 = vcmask 916480   ;;  %s364_s2 = scalar_lea.vmem [#allocation13], %s1877_s28 }
  0x9d   : > { %v367_v18 = vld [vmem:[%s2867_s7] sm:$0xf]  ;;  %v2301_v30 = vld [vmem:[#allocation10 + $0x38] sm:$0xff]   ;;  %v2302_v31 = vld [vmem:[#allocation10 + $0x30] sm:$0xff]   ;;  %s1732_s25 = sshll.u32 %s364_s2, 4  ;;  %s1933_s17 = sshll.u32 %s2665_s27, 7  ;;  %s3099_s25 = int_to_ptr.vmem [resolvable:$true] %s1732_s25 }
  0x9e   : > { %2028 = vmatpush3.bf16.msra.mxu1 %v2285_v2  ;;  %2008 = vmatpush3.bf16.msra.mxu0 %v2288_v4  ;;  %v2303_v32 = vld [vmem:[#allocation10 + $0x28] sm:$0xff]   ;;  %v2304_v33 = vld [vmem:[#allocation10 + $0x20] sm:$0xff]   ;;  %v2305_v34 = vld [vmem:[#allocation10 + $0x18] sm:$0xff]   ;;  %s3104_s0 = scalar_lea.hbm %s3151_s6, %s1933_s17  ;;  %s1719_s10 = scalar_lea.sflag [#allocation4], %s2863_s12 }
  0x9f   : > { %2029 = vmatprep.subr.bf16.mxu1 %v2599_v0  ;;  %2009 = vmatprep.subr.bf16.mxu0 %v2599_v0  ;;  %v2306_v35 = vld [vmem:[#allocation10 + $0x10] sm:$0xff]   ;;  %v2307_v36 = vld [vmem:[#allocation10 + $0x8] sm:$0xff]   ;;  %v2308_v37 = vld [vmem:[#allocation10] sm:$0xff]   ;;  %s2509_s29 = scalar_lea.vmem %s3099_s25, 128  ;;  %p3179_p9 = scmp.ne.s32.totalorder %s3164_s18, 0 }
  0xa0   : > { %p2510_p2 = scmp.ne.s32.totalorder %s3099_s25, %s2509_s29  ;;  %s2608_s27 = smov [#allocation13]  }
  0xa1   : > { %s2513_s28 = sshll.u32 %s2608_s27, 4  ;;  %s2514_s28 = int_to_ptr.vmem [resolvable:$false] %s2513_s28 }
  0xa2   : > { %2030 = vmatpush3.bf16.msra.mxu1 %v2287_v5  ;;  %2010 = vmatpush3.bf16.msra.mxu0 %v2290_v6  ;;  %p2511_p11 = pnand %p2510_p2, %p3179_p9  ;;  %p2516_p1 = scmp.lt.s32.totalorder %s3099_s25, %s2514_s28 }
  0xa3   : > { %2031 = vmatprep.subr.bf16.mxu1 %v2599_v0  ;;  %2011 = vmatprep.subr.bf16.mxu0 %v2599_v0 }
  0xa4   : > { %p2512_p12 = pneg %p2511_p11 }
  0xa6   : > { %2032 = vmatpush3.bf16.msra.mxu1 %v2289_v7  ;;  %2012 = vmatpush3.bf16.msra.mxu0 %v2292_v8 }
  0xa7   : > { %2033 = vmatprep.subr.bf16.mxu1 %v2599_v0  ;;  %2013 = vmatprep.subr.bf16.mxu0 %v2599_v0 }
  0xaa   : > { %2034 = vmatpush3.bf16.msra.mxu1 %v2291_v9  ;;  %2014 = vmatpush3.bf16.msra.mxu0 %v2294_v10 }
  0xab   : > { %2035 = vmatprep.subr.bf16.mxu1 %v2599_v0  ;;  %2015 = vmatprep.subr.bf16.mxu0 %v2599_v0 }
  0xae   : > { %2036 = vmatpush3.bf16.msra.mxu1 %v2293_v11  ;;  %2016 = vmatpush3.bf16.msra.mxu0 %v2296_v12 }
  0xaf   : > { %2037 = vmatprep.subr.bf16.mxu1 %v2599_v0  ;;  %2017 = vmatprep.subr.bf16.mxu0 %v2599_v0 }
  0xb2   : > { %2038 = vmatpush3.bf16.msra.mxu1 %v2295_v13  ;;  %2018 = vmatpush3.bf16.msra.mxu0 %v2298_v14 }
  0xb3   : > { %2039 = vmatprep.subr.bf16.mxu1 %v2599_v0  ;;  %2019 = vmatprep.subr.bf16.mxu0 %v2599_v0 }
  0xb6   : > { %2040 = vmatpush3.bf16.msra.mxu1 %v2297_v15  ;;  %2020 = vmatpush3.bf16.msra.mxu0 %v2300_v16 }
  0xb7   : > { %2065 = vmatprep.subr.bf16.mxu1 %v2599_v0  ;;  %2045 = vmatprep.subr.bf16.mxu0 %v2599_v0 }
  0xb9   : > { %2042 = vmatmul.mubr.bf16.vlgmr.msra.gmra.mxu1 %v2299_v17  ;;  %2022 = vmatmul.mubr.bf16.vlgmr.msra.gmra.mxu0 %v367_v18 }
  0xba   : > { %2067 = vmatprep.mubr.msk.bf16.mxu1 %vm2600_vm0, %v2599_v0  ;;  %2061 = vmatprep.mubr.msk.bf16.mxu0 %vm2600_vm0, %v2599_v0 }
  0xbb   : > { %2046 = vmatpush3.bf16.msra.mxu0 %v2301_v30 }
  0xbc   : > { %2047 = vmatprep.subr.bf16.mxu0 %v2599_v0 }
  0xbf   : > { %2048 = vmatpush3.bf16.msra.mxu0 %v2302_v31 }
  0xc0   : > { %2049 = vmatprep.subr.bf16.mxu0 %v2599_v0 }
  0xc3   : > { %2050 = vmatpush3.bf16.msra.mxu0 %v2303_v32 }
  0xc4   : > { %2051 = vmatprep.subr.bf16.mxu0 %v2599_v0 }
  0xc7   : > { %2052 = vmatpush3.bf16.msra.mxu0 %v2304_v33 }
  0xc8   : > { %2053 = vmatprep.subr.bf16.mxu0 %v2599_v0 }
  0xcb   : > { %2054 = vmatpush3.bf16.msra.mxu0 %v2305_v34 }
  0xcc   : > { %2055 = vmatprep.subr.bf16.mxu0 %v2599_v0 }
  0xcf   : > { %2056 = vmatpush3.bf16.msra.mxu0 %v2306_v35 }
  0xd0   : > { %2057 = vmatprep.subr.bf16.mxu0 %v2599_v0 }
  0xd3   : > { %2058 = vmatpush3.bf16.msra.mxu0 %v2307_v36 }
  0xd4   : > { %2059 = vmatprep.subr.bf16.mxu0 %v2599_v0 }
  0xd7   : > { %2060 = vmatpush3.bf16.msra.mxu0 %v2308_v37 }
  0xd8   : > { %2113 = vmatprep.subr.bf16.mxu0 %v2599_v0 }
  0xda   : > { %2062 = vmatmul.mubr.bf16.vlgmr.msra.gmra.mxu0 %v2299_v17 }
  0xdb   : > { %2115 = vmatprep.mubr.msk.bf16.mxu0 %vm2600_vm0, %v2599_v0 }
 0x179   : > { %v578_v19 = vpop.f32.mrf.mxu1  ;;  %v468_v21 = vpop.f32.mrf.mxu0 }
 0x17a   : > { %v2925_v27 = vpack.c.bf16 %v468_v21, %v468_v21 }
 0x17b   : > { %v2043_v20 = vpop.f32.mrf.mxu1  ;;  %v2023_v23 = vpop.f32.mrf.mxu0 }
 0x17d   : > { %v581_v22 = vpop.f32.mrf.mxu1  ;;  %v471_v26 = vpop.f32.mrf.mxu0 }
 0x17e   : > { %v2923_v24 = vpack.c.bf16 %v581_v22, %v578_v19 }
 0x17f   : > { %v2044_v25 = vpop.f32.mrf.mxu1  ;;  %v2024_v29 = vpop.f32.mrf.mxu0 }
 0x180   : > { %801 = vrot.lane.b32.xlu1 %v2923_v24, %s2601_s16  ;;  %v698_v28 = vsel %vm693_vm1, %v2923_v24, 0 }
 0x181   : > { %2066 = vmatpush3.bf16.xpose.msra.mxu1 %v698_v28 }
 0x182   : > { %2071 = vmatprep.subr.bf16.mxu1 %v2599_v0 }
 0x184   : > { %798 = vrot.lane.b32.xlu1 %v2925_v27, %s2601_s16 }
 0x188   : > { %2068 = vmatmul.mubr.msk.bf16.vlgmr.msra.gmra.mxu1 %vm693_vm1, %v2925_v27 }
 0x189   : > { %2073 = vmatprep.mubr.msk.bf16.mxu1 %vm2600_vm0, %v2599_v0 }
 0x19a   : > { %v683_v44 = vpop.f32.mrf.mxu0 }
 0x19c   : > { %v2063_v45 = vpop.f32.mrf.mxu0 }
 0x19e   : > { %v686_v51 = vpop.f32.mrf.mxu0 }
 0x19f   : > { %v2950_v52 = vpack.c.bf16 %v686_v51, %v683_v44 }
 0x1a0   : > { %v2064_v53 = vpop.f32.mrf.mxu0 }
 0x1a1   : > { %2072 = vmatpush3.bf16.msra.mxu1 %v2950_v52 }
 0x1a2   : > { %2077 = vmatprep.subr.bf16.mxu1 %v2599_v0 }
 0x1f2   : > { %v802_v57 = vpop.permute.xlu1 %801 }
 0x1f3   : > { %v807_v59 = vsel %vm693_vm1, %v802_v57, 0 }
 0x1f6   : > { %v799_v60 = vpop.permute.xlu1 %798 }
 0x248   : > { %v734_v38 = vpop.f32.mrf.mxu1 }
 0x249   : > { %v740_v39 = vmul.f32 0.25, %v734_v38 }
 0x24a   : > { %v2069_v40 = vpop.f32.mrf.mxu1 }
 0x24b   : > { %v741_v41 = vsel %vm693_vm1, %v740_v39, -inf }
 0x24c   : > { %742 = vmax.xlane.f32.xlu0 %v741_v41  ;;  %v737_v42 = vpop.f32.mrf.mxu1 }
 0x24e   : > { %v2070_v43 = vpop.f32.mrf.mxu1 }
 0x2d5   : > { %v743_v46 = vpop.xlane.xlu0 %742 }
 0x2d6   : > { %v744_v47 = vsub.f32 %v740_v39, %v743_v46 }
 0x2d8   : > { %v745_v48 = vmul.f32 1.442695, %v744_v47 }
 0x2da   : > { %2317 = vpow2.f32 %v745_v48 }
 0x2e7   : > { %v2318_v49 = vpop.eup %2317 }
 0x2e8   : > { %v747_v50 = vsel %vm693_vm1, %v2318_v49, 0.0 }
 0x2e9   : > { %748 = vadd.xlane.f32.xlu0 %v747_v50 }
 0x372   : > { %v749_v54 = vpop.xlane.xlu0 %748 }
 0x373   : > { %2319 = vrcp.f32 %v749_v54 }
 0x380   : > { %v2320_v55 = vpop.eup %2319 }
 0x381   : > { %v751_v56 = vmul.f32 %v2320_v55, %v2318_v49 }
 0x383   : > { %v752_v58 = vpack.c.bf16 %v751_v56, %v751_v56 }
 0x385   : > { %2074 = vmatmul.mubr.msk.bf16.vlgmr.msra.gmra.mxu1 %vm693_vm1, %v752_v58 }
 0x386   : > { %2078 = vmatpush3.bf16.xpose.msra.mxu1 %v807_v59  ;;  %2079 = vmatprep.mubr.msk.bf16.mxu1 %vm2600_vm0, %v2599_v0 }
 0x387   : > { %2083 = vmatprep.subr.bf16.mxu1 %v2599_v0 }
 0x38d   : > { %2080 = vmatmul.mubr.msk.bf16.vlgmr.msra.gmra.mxu1 %vm693_vm1, %v799_v60 }
 0x38e   : > { %2085 = vmatprep.mubr.msk.bf16.mxu1 %vm2600_vm0, %v2599_v0 }
 0x445   : > { %v2962_v61 = vpop.f32.mrf.mxu1 }
 0x447   : > { %v2075_v62 = vpop.f32.mrf.mxu1 }
 0x449   : > { %v793_v63 = vpop.f32.mrf.mxu1 }
 0x44b   : > { %v2076_v1 = vpop.f32.mrf.mxu1 }
 0x44d   : > { %v843_v2 = vpop.f32.mrf.mxu1 }
 0x44e   : > { %v849_v3 = vmul.f32 0.25, %v843_v2 }
 0x44f   : > { %v2081_v4 = vpop.f32.mrf.mxu1 }
 0x450   : > { %v850_v5 = vsel %vm693_vm1, %v849_v3, -inf }
 0x451   : > { %851 = vmax.xlane.f32.xlu0 %v850_v5  ;;  %v846_v6 = vpop.f32.mrf.mxu1 }
 0x453   : > { %v2082_v7 = vpop.f32.mrf.mxu1 }
 0x467   : > { %863 = vrot.lane.b32.xlu0 %v2950_v52, %s2601_s16 }
 0x46b   : > { %912 = vrot.lane.b32.xlu0 %v2923_v24, %s2602_s13 }
 0x46f   : > { %910 = vrot.lane.b32.xlu0 %v2925_v27, %s2602_s13 }
 0x4da   : > { %v852_v8 = vpop.xlane.xlu0 %851 }
 0x4db   : > { %v853_v9 = vsub.f32 %v849_v3, %v852_v8 }
 0x4dd   : > { %v854_v10 = vmul.f32 1.442695, %v853_v9 }
 0x4de   : > { %v864_v11 = vpop.permute.xlu0 %863 }
 0x4df   : > { %2321 = vpow2.f32 %v854_v10  ;;  %2084 = vmatpush3.bf16.msra.mxu1 %v864_v11 }
 0x4e0   : > { %2089 = vmatprep.subr.bf16.mxu1 %v2599_v0 }
 0x4e2   : > { %v913_v17 = vpop.permute.xlu0 %912 }
 0x4e3   : > { %v918_v19 = vsel %vm693_vm1, %v913_v17, 0 }
 0x4e6   : > { %v911_v20 = vpop.permute.xlu0 %910 }
 0x4ec   : > { %v2322_v12 = vpop.eup %2321 }
 0x4ed   : > { %v856_v13 = vsel %vm693_vm1, %v2322_v12, 0.0 }
 0x4ee   : > { %857 = vadd.xlane.f32.xlu1 %v856_v13 }
 0x4ff   : > { %973 = vrot.lane.b32.xlu1 %v2950_v52, %s2602_s13 }
 0x577   : > { %v858_v14 = vpop.xlane.xlu1 %857 }
 0x578   : > { %2323 = vrcp.f32 %v858_v14 }
 0x57b   : > { %v974_v21 = vpop.permute.xlu1 %973 }
 0x585   : > { %v2324_v15 = vpop.eup %2323 }
 0x586   : > { %v860_v16 = vmul.f32 %v2324_v15, %v2322_v12 }
 0x588   : > { %v861_v18 = vpack.c.bf16 %v860_v16, %v860_v16 }
 0x58a   : > { %2086 = vmatmul.mubr.msk.bf16.vlgmr.msra.gmra.mxu1 %vm693_vm1, %v861_v18 }
 0x58b   : > { %2090 = vmatpush3.bf16.xpose.msra.mxu1 %v918_v19  ;;  %2091 = vmatprep.mubr.msk.bf16.mxu1 %vm2600_vm0, %v2599_v0 }
 0x58c   : > { %2095 = vmatprep.subr.bf16.mxu1 %v2599_v0 }
 0x592   : > { %2092 = vmatmul.mubr.msk.bf16.vlgmr.msra.gmra.mxu1 %vm693_vm1, %v911_v20 }
 0x593   : > { %2096 = vmatpush3.bf16.msra.mxu1 %v974_v21  ;;  %2097 = vmatprep.mubr.msk.bf16.mxu1 %vm2600_vm0, %v2599_v0 }
 0x594   : > { %2101 = vmatprep.subr.bf16.mxu1 %v2599_v0 }
 0x64a   : > { %v2984_v22 = vpop.f32.mrf.mxu1 }
 0x64c   : > { %v2087_v23 = vpop.f32.mrf.mxu1 }
 0x64e   : > { %v906_v25 = vpop.f32.mrf.mxu1 }
 0x650   : > { %v2088_v26 = vpop.f32.mrf.mxu1 }
 0x652   : > { %v954_v28 = vpop.f32.mrf.mxu1 }
 0x653   : > { %v960_v29 = vmul.f32 0.25, %v954_v28 }
 0x654   : > { %v2093_v30 = vpop.f32.mrf.mxu1 }
 0x655   : > { %v961_v31 = vsel %vm693_vm1, %v960_v29, -inf }
 0x656   : > { %962 = vmax.xlane.f32.xlu0 %v961_v31  ;;  %v957_v32 = vpop.f32.mrf.mxu1 }
 0x658   : > { %v2094_v33 = vpop.f32.mrf.mxu1 }
 0x66c   : > { %1132 = vrot.lane.b32.xlu0 %v2923_v24, %s2603_s26 }
 0x670   : > { %1460 = vrot.lane.b32.xlu0 %v2925_v27, %s2604_s15 }
 0x6df   : > { %v963_v34 = vpop.xlane.xlu0 %962 }
 0x6e0   : > { %v964_v35 = vsub.f32 %v960_v29, %v963_v34 }
 0x6e2   : > { %v965_v36 = vmul.f32 1.442695, %v964_v35 }
 0x6e3   : > { %v1133_v37 = vpop.permute.xlu0 %1132 }
 0x6e4   : > { %2325 = vpow2.f32 %v965_v36  ;;  %v1138_v38 = vsel %vm693_vm1, %v1133_v37, 0 }
 0x6e5   : > { %2114 = vmatpush3.bf16.xpose.msra.mxu0 %v1138_v38 }
 0x6e6   : > { %2125 = vmatprep.subr.bf16.mxu0 %v2599_v0 }
 0x6e7   : > { %v1461_v56 = vpop.permute.xlu0 %1460 }
 0x6f1   : > { %v2326_v39 = vpop.eup %2325 }
 0x6f2   : > { %v967_v40 = vsel %vm693_vm1, %v2326_v39, 0.0 }
 0x6f3   : > { %968 = vadd.xlane.f32.xlu1 %v967_v40 }
 0x704   : > { %1022 = vrot.lane.b32.xlu1 %v2923_v24, %s2605_s8 }
 0x708   : > { %1020 = vrot.lane.b32.xlu1 %v2925_v27, %s2605_s8 }
 0x70c   : > { %1130 = vrot.lane.b32.xlu1 %v2925_v27, %s2603_s26 }
 0x710   : > { %1242 = vrot.lane.b32.xlu1 %v2923_v24, %s2606_s20 }
 0x714   : > { %1240 = vrot.lane.b32.xlu1 %v2925_v27, %s2606_s20 }
 0x718   : > { %1352 = vrot.lane.b32.xlu1 %v2923_v24, %s2607_s11 }
 0x71c   : > { %1350 = vrot.lane.b32.xlu1 %v2925_v27, %s2607_s11 }
 0x720   : > { %1462 = vrot.lane.b32.xlu1 %v2923_v24, %s2604_s15 }
 0x77c   : > { %v969_v41 = vpop.xlane.xlu1 %968 }
 0x77d   : > { %2327 = vrcp.f32 %v969_v41 }
 0x780   : > { %v1023_v42 = vpop.permute.xlu1 %1022 }
 0x781   : > { %v1028_v27 = vsel %vm693_vm1, %v1023_v42, 0 }
 0x784   : > { %v1021_v43 = vpop.permute.xlu1 %1020 }
 0x788   : > { %v1131_v44 = vpop.permute.xlu1 %1130 }
 0x789   : > { %2116 = vmatmul.mubr.msk.bf16.vlgmr.msra.gmra.mxu0 %vm693_vm1, %v1131_v44 }
 0x78a   : > { %v2328_v45 = vpop.eup %2327  ;;  %2127 = vmatprep.mubr.msk.bf16.mxu0 %vm2600_vm0, %v2599_v0 }
 0x78b   : > { %v971_v46 = vmul.f32 %v2328_v45, %v2326_v39 }
 0x78c   : > { %v1243_v47 = vpop.permute.xlu1 %1242 }
 0x78d   : > { %v1248_v48 = vsel %vm693_vm1, %v1243_v47, 0  ;;  %v972_v49 = vpack.c.bf16 %v971_v46, %v971_v46 }
 0x78e   : > { %2126 = vmatpush3.bf16.xpose.msra.mxu0 %v1248_v48 }
 0x78f   : > { %2098 = vmatmul.mubr.msk.bf16.vlgmr.msra.gmra.mxu1 %vm693_vm1, %v972_v49  ;;  %2137 = vmatprep.subr.bf16.mxu0 %v2599_v0 }
 0x790   : > { %2102 = vmatpush3.bf16.xpose.msra.mxu1 %v1028_v27  ;;  %v1241_v24 = vpop.permute.xlu1 %1240  ;;  %2103 = vmatprep.mubr.msk.bf16.mxu1 %vm2600_vm0, %v2599_v0 }
 0x791   : > { %2107 = vmatprep.subr.bf16.mxu1 %v2599_v0 }
 0x794   : > { %v1353_v50 = vpop.permute.xlu1 %1352 }
 0x795   : > { %v1358_v51 = vsel %vm693_vm1, %v1353_v50, 0  ;;  %2128 = vmatmul.mubr.msk.bf16.vlgmr.msra.gmra.mxu0 %vm693_vm1, %v1241_v24 }
 0x796   : > { %2138 = vmatpush3.bf16.xpose.msra.mxu0 %v1358_v51  ;;  %2139 = vmatprep.mubr.msk.bf16.mxu0 %vm2600_vm0, %v2599_v0 }
 0x797   : > { %2104 = vmatmul.mubr.msk.bf16.vlgmr.msra.gmra.mxu1 %vm693_vm1, %v1021_v43  ;;  %2149 = vmatprep.subr.bf16.mxu0 %v2599_v0 }
 0x798   : > { %v1351_v53 = vpop.permute.xlu1 %1350  ;;  %2109 = vmatprep.mubr.msk.bf16.mxu1 %vm2600_vm0, %v2599_v0 }
 0x79c   : > { %v1463_v54 = vpop.permute.xlu1 %1462 }
 0x79d   : > { %v1468_v55 = vsel %vm693_vm1, %v1463_v54, 0  ;;  %2140 = vmatmul.mubr.msk.bf16.vlgmr.msra.gmra.mxu0 %vm693_vm1, %v1351_v53 }
 0x79e   : > { %2150 = vmatpush3.bf16.xpose.msra.mxu0 %v1468_v55  ;;  %2151 = vmatprep.mubr.msk.bf16.mxu0 %vm2600_vm0, %v2599_v0 }
 0x79f   : > { %2161 = vmatprep.subr.bf16.mxu0 %v2599_v0 }
 0x7a5   : > { %2152 = vmatmul.mubr.msk.bf16.vlgmr.msra.gmra.mxu0 %vm693_vm1, %v1461_v56 }
 0x7a6   : > { %2177 = vmatprep.mubr.msk.bf16.mxu0 %vm2600_vm0, %v2599_v0 }
 0x849   : > { %v1174_v57 = vpop.f32.mrf.mxu0 }
 0x84a   : > { %v1180_v58 = vmul.f32 0.25, %v1174_v57  ;;  %v909_v57 = vpack.c.bf16 %v2984_v22, %v2984_v22 }
 0x84b   : > { %v2117_v59 = vpop.f32.mrf.mxu0 }
 0x84c   : > { %v1181_v60 = vsel %vm693_vm1, %v1180_v58, -inf }
 0x84d   : > { %1182 = vmax.xlane.f32.xlu0 %v1181_v60  ;;  %v1177_v62 = vpop.f32.mrf.mxu0 }
 0x84f   : > { %v3037_v63 = vpop.f32.mrf.mxu1  ;;  %v2118_v1 = vpop.f32.mrf.mxu0 }
 0x850   : > { %v1019_v56 = vpack.c.bf16 %v3037_v63, %v3037_v63 }
 0x851   : > { %v2099_v2 = vpop.f32.mrf.mxu1 }
 0x853   : > { %v1016_v3 = vpop.f32.mrf.mxu1 }
 0x855   : > { %v2100_v4 = vpop.f32.mrf.mxu1  ;;  %v1284_v5 = vpop.f32.mrf.mxu0 }
 0x856   : > { %v1290_v6 = vmul.f32 0.25, %v1284_v5 }
 0x857   : > { %v1064_v7 = vpop.f32.mrf.mxu1  ;;  %v2129_v8 = vpop.f32.mrf.mxu0 }
 0x858   : > { %v1070_v9 = vmul.f32 0.25, %v1064_v7  ;;  %v1291_v10 = vsel %vm693_vm1, %v1290_v6, -inf }
 0x859   : > { %v2105_v11 = vpop.f32.mrf.mxu1  ;;  %1292 = vmax.xlane.f32.xlu0 %v1291_v10  ;;  %v1287_v12 = vpop.f32.mrf.mxu0 }
 0x85a   : > { %v1071_v13 = vsel %vm693_vm1, %v1070_v9, -inf }
 0x85b   : > { %1072 = vmax.xlane.f32.xlu1 %v1071_v13  ;;  %v1067_v14 = vpop.f32.mrf.mxu1  ;;  %v2130_v15 = vpop.f32.mrf.mxu0 }
 0x85d   : > { %v2106_v16 = vpop.f32.mrf.mxu1  ;;  %v1394_v17 = vpop.f32.mrf.mxu0 }
 0x85e   : > { %v1400_v18 = vmul.f32 0.25, %v1394_v17 }
 0x85f   : > { %v2141_v19 = vpop.f32.mrf.mxu0 }
 0x860   : > { %v1401_v20 = vsel %vm693_vm1, %v1400_v18, -inf  ;;  %v2309_v19 = vld [vmem:[#allocation11 + $0x38] sm:$0xff]  }
 0x861   : > { %1402 = vmax.xlane.f32.xlu1 %v1401_v20  ;;  %v1397_v21 = vpop.f32.mrf.mxu0  ;;  %2162 = vmatpush3.bf16.msra.mxu0 %v2309_v19  ;;  %v2310_v20 = vld [vmem:[#allocation11 + $0x30] sm:$0xff]  }
 0x862   : > { %2163 = vmatprep.subr.bf16.mxu0 %v2599_v0  ;;  %v2311_v21 = vld [vmem:[#allocation11 + $0x28] sm:$0xff]  }
 0x863   : > { %v2142_v23 = vpop.f32.mrf.mxu0 }
 0x865   : > { %v1504_v25 = vpop.f32.mrf.mxu0  ;;  %2164 = vmatpush3.bf16.msra.mxu0 %v2310_v20 }
 0x866   : > { %v1510_v26 = vmul.f32 0.25, %v1504_v25  ;;  %2165 = vmatprep.subr.bf16.mxu0 %v2599_v0  ;;  %v2312_v25 = vld [vmem:[#allocation11 + $0x20] sm:$0xff]  }
 0x867   : > { %v2153_v28 = vpop.f32.mrf.mxu0 }
 0x868   : > { %v1511_v29 = vsel %vm693_vm1, %v1510_v26, -inf }
 0x869   : > { %1512 = vmax.xlane.f32.xlu0 %v1511_v29  ;;  %v1507_v30 = vpop.f32.mrf.mxu0  ;;  %2166 = vmatpush3.bf16.msra.mxu0 %v2311_v21 }
 0x86a   : > { %2167 = vmatprep.subr.bf16.mxu0 %v2599_v0 }
 0x86b   : > { %v2154_v31 = vpop.f32.mrf.mxu0 }
 0x86c   : > { %v2313_v31 = vld [vmem:[#allocation11 + $0x18] sm:$0xff]  }
 0x86d   : > { %2168 = vmatpush3.bf16.msra.mxu0 %v2312_v25 }
 0x86e   : > { %2169 = vmatprep.subr.bf16.mxu0 %v2599_v0 }
 0x871   : > { %2170 = vmatpush3.bf16.msra.mxu0 %v2313_v31 }
 0x872   : > { %2171 = vmatprep.subr.bf16.mxu0 %v2599_v0 }
 0x8d6   : > { %v1183_v32 = vpop.xlane.xlu0 %1182 }
 0x8d7   : > { %v1184_v33 = vsub.f32 %v1180_v58, %v1183_v32 }
 0x8d9   : > { %v1185_v34 = vmul.f32 1.442695, %v1184_v33  ;;  %v2314_v33 = vld [vmem:[#allocation11 + $0x10] sm:$0xff]  }
 0x8da   : > { %2172 = vmatpush3.bf16.msra.mxu0 %v2314_v33 }
 0x8db   : > { %2329 = vpow2.f32 %v1185_v34  ;;  %2173 = vmatprep.subr.bf16.mxu0 %v2599_v0 }
 0x8e2   : > { %v1293_v35 = vpop.xlane.xlu0 %1292 }
 0x8e3   : > { %v1294_v36 = vsub.f32 %v1290_v6, %v1293_v35 }
 0x8e4   : > { %v1073_v37 = vpop.xlane.xlu1 %1072 }
 0x8e5   : > { %v1295_v38 = vmul.f32 1.442695, %v1294_v36  ;;  %v1074_v39 = vsub.f32 %v1070_v9, %v1073_v37 }
 0x8e7   : > { %2331 = vpow2.f32 %v1295_v38  ;;  %v1075_v40 = vmul.f32 1.442695, %v1074_v39  ;;  %v2315_v38 = vld [vmem:[#allocation11 + $0x8] sm:$0xff]  }
 0x8e8   : > { %v2330_v41 = vpop.eup %2329  ;;  %2174 = vmatpush3.bf16.msra.mxu0 %v2315_v38 }
 0x8e9   : > { %2333 = vpow2.f32 %v1075_v40  ;;  %v1187_v42 = vsel %vm693_vm1, %v2330_v41, 0.0  ;;  %v2316_v40 = vld [vmem:[#allocation11] sm:$0xff]   ;;  %2175 = vmatprep.subr.bf16.mxu0 %v2599_v0 }
 0x8ea   : > { %v1403_v43 = vpop.xlane.xlu1 %1402  ;;  %1188 = vadd.xlane.f32.xlu0 %v1187_v42 }
 0x8eb   : > { %v1404_v44 = vsub.f32 %v1400_v18, %v1403_v43 }
 0x8ec   : > { %2176 = vmatpush3.bf16.msra.mxu0 %v2316_v40 }
 0x8ed   : > { %v1405_v45 = vmul.f32 1.442695, %v1404_v44 }
 0x8ef   : > { %2335 = vpow2.f32 %v1405_v45 }
 0x8f2   : > { %v1513_v46 = vpop.xlane.xlu0 %1512 }
 0x8f3   : > { %v1514_v47 = vsub.f32 %v1510_v26, %v1513_v46 }
 0x8f4   : > { %v2332_v48 = vpop.eup %2331 }
 0x8f5   : > { %v1515_v49 = vmul.f32 1.442695, %v1514_v47  ;;  %v1297_v27 = vsel %vm693_vm1, %v2332_v48, 0.0 }
 0x8f6   : > { %v2334_v24 = vpop.eup %2333  ;;  %1298 = vadd.xlane.f32.xlu1 %v1297_v27 }
 0x8f7   : > { %2337 = vpow2.f32 %v1515_v49  ;;  %v1077_v50 = vsel %vm693_vm1, %v2334_v24, 0.0 }
 0x8fa   : > { %1078 = vadd.xlane.f32.xlu1 %v1077_v50 }
 0x8fc   : > { %v2336_v51 = vpop.eup %2335 }
 0x8fd   : > { %v1407_v53 = vsel %vm693_vm1, %v2336_v51, 0.0 }
 0x8fe   : > { %1408 = vadd.xlane.f32.xlu0 %v1407_v53 }
 0x904   : > { %v2338_v54 = vpop.eup %2337 }
 0x905   : > { %v1517_v55 = vsel %vm693_vm1, %v2338_v54, 0.0 }
 0x906   : > { %1518 = vadd.xlane.f32.xlu0 %v1517_v55  ;;  %v796_v55 = vpack.c.bf16 %v2962_v61, %v2962_v61 }
 0x90b   : > { %1083 = vrot.lane.b32.xlu1 %v2950_v52, %s2605_s8 }
 0x90f   : > { %1303 = vrot.lane.b32.xlu1 %v2950_v52, %s2606_s20 }
 0x913   : > { %1413 = vrot.lane.b32.xlu1 %v2950_v52, %s2607_s11 }
 0x917   : > { %1523 = vrot.lane.b32.xlu1 %v2950_v52, %s2604_s15 }
 0x91b   : > { %1574 = vrot.lane.b32.xlu1 %v1019_v56, %s2607_s11 }
 0x91c   : > { %1193 = vrot.lane.b32.xlu0 %v2950_v52, %s2603_s26 }
 0x920   : > { %1571 = vrot.lane.b32.xlu0 %v909_v57, %s2604_s15 }
 0x973   : > { %v1189_v60 = vpop.xlane.xlu0 %1188 }
 0x97f   : > { %v1299_v58 = vpop.xlane.xlu1 %1298 }
 0x983   : > { %v1079_v59 = vpop.xlane.xlu1 %1078 }
 0x984   : > { %2339 = vrcp.f32 %v1079_v59 }
 0x985   : > { %2341 = vrcp.f32 %v1189_v60 }
 0x986   : > { %2343 = vrcp.f32 %v1299_v58 }
 0x987   : > { %v1084_v62 = vpop.permute.xlu1 %1083  ;;  %v1409_v63 = vpop.xlane.xlu0 %1408 }
 0x988   : > { %2108 = vmatpush3.bf16.msra.mxu1 %v1084_v62  ;;  %2345 = vrcp.f32 %v1409_v63 }
 0x989   : > { %2119 = vmatprep.subr.bf16.mxu1 %v2599_v0 }
 0x98b   : > { %v1304_v8 = vpop.permute.xlu1 %1303 }
 0x98f   : > { %v1519_v1 = vpop.xlane.xlu0 %1518  ;;  %v1414_v12 = vpop.permute.xlu1 %1413 }
 0x990   : > { %2347 = vrcp.f32 %v1519_v1 }
 0x991   : > { %v2340_v2 = vpop.eup %2339 }
 0x992   : > { %v1081_v3 = vmul.f32 %v2340_v2, %v2334_v24  ;;  %v2342_v4 = vpop.eup %2341 }
 0x993   : > { %v1194_v5 = vpop.permute.xlu0 %1193  ;;  %v1191_v22 = vmul.f32 %v2342_v4, %v2330_v41  ;;  %v2344_v7 = vpop.eup %2343 }
 0x994   : > { %v1082_v52 = vpack.c.bf16 %v1081_v3, %v1081_v3  ;;  %v1301_v9 = vmul.f32 %v2344_v7, %v2332_v48  ;;  %v1524_v16 = vpop.permute.xlu1 %1523 }
 0x995   : > { %v1192_v6 = vpack.c.bf16 %v1191_v22, %v1191_v22  ;;  %v2346_v11 = vpop.eup %2345 }
 0x996   : > { %2110 = vmatmul.mubr.msk.bf16.vlgmr.msra.gmra.mxu1 %vm693_vm1, %v1082_v52  ;;  %v1302_v10 = vpack.c.bf16 %v1301_v9, %v1301_v9  ;;  %v1411_v13 = vmul.f32 %v2346_v11, %v2336_v51 }
 0x997   : > { %2120 = vmatpush3.bf16.msra.mxu1 %v1194_v5  ;;  %2121 = vmatprep.mubr.msk.bf16.mxu1 %vm2600_vm0, %v2599_v0  ;;  %v1572_v53 = vpop.permute.xlu0 %1571 }
 0x998   : > { %2131 = vmatprep.subr.bf16.mxu1 %v2599_v0  ;;  %v1412_v14 = vpack.c.bf16 %v1411_v13, %v1411_v13  ;;  %v1593_v57 = vsel %vm693_vm1, %v796_v55, %v1572_v53 }
 0x99d   : > { %v2348_v15 = vpop.eup %2347 }
 0x99e   : > { %2122 = vmatmul.mubr.msk.bf16.vlgmr.msra.gmra.mxu1 %vm693_vm1, %v1192_v6  ;;  %v1521_v17 = vmul.f32 %v2348_v15, %v2338_v54  ;;  %v1575_v54 = vpop.permute.xlu1 %1574 }
 0x99f   : > { %2132 = vmatpush3.bf16.msra.mxu1 %v1304_v8  ;;  %2133 = vmatprep.mubr.msk.bf16.mxu1 %vm2600_vm0, %v2599_v0  ;;  %v1596_v59 = vsel %vm1594_vm2, %v1593_v57, %v1575_v54 }
 0x9a0   : > { %2143 = vmatprep.subr.bf16.mxu1 %v2599_v0  ;;  %v1522_v18 = vpack.c.bf16 %v1521_v17, %v1521_v17 }
 0x9a6   : > { %2134 = vmatmul.mubr.msk.bf16.vlgmr.msra.gmra.mxu1 %vm693_vm1, %v1302_v10 }
 0x9a7   : > { %2144 = vmatpush3.bf16.msra.mxu1 %v1414_v12  ;;  %2145 = vmatprep.mubr.msk.bf16.mxu1 %vm2600_vm0, %v2599_v0 }
 0x9a8   : > { %2155 = vmatprep.subr.bf16.mxu1 %v2599_v0 }
 0x9ae   : > { %2146 = vmatmul.mubr.msk.bf16.vlgmr.msra.gmra.mxu1 %vm693_vm1, %v1412_v14 }
 0x9af   : > { %2156 = vmatpush3.bf16.msra.mxu1 %v1524_v16  ;;  %2157 = vmatprep.mubr.msk.bf16.mxu1 %vm2600_vm0, %v2599_v0 }
 0x9b6   : > { %2158 = vmatmul.mubr.msk.bf16.vlgmr.msra.gmra.mxu1 %vm693_vm1, %v1522_v18 }
 0xa56   : > { %v1123_v23 = vpop.f32.mrf.mxu1 }
 0xa57   : > { %v1129_v26 = vpack.c.bf16 %v1123_v23, %v1123_v23 }
 0xa58   : > { %v2111_v28 = vpop.f32.mrf.mxu1 }
 0xa59   : > { %1577 = vrot.lane.b32.xlu0 %v1129_v26, %s2606_s20 }
 0xa5a   : > { %v1126_v29 = vpop.f32.mrf.mxu1 }
 0xa5c   : > { %v2112_v30 = vpop.f32.mrf.mxu1 }
 0xa5e   : > { %v1233_v32 = vpop.f32.mrf.mxu1 }
 0xa5f   : > { %v1239_v34 = vpack.c.bf16 %v1233_v32, %v1233_v32 }
 0xa60   : > { %v2123_v35 = vpop.f32.mrf.mxu1 }
 0xa61   : > { %1580 = vrot.lane.b32.xlu1 %v1239_v34, %s2603_s26 }
 0xa62   : > { %v1236_v36 = vpop.f32.mrf.mxu1 }
 0xa64   : > { %v2124_v37 = vpop.f32.mrf.mxu1 }
 0xa66   : > { %v1343_v39 = vpop.f32.mrf.mxu1 }
 0xa67   : > { %v1349_v41 = vpack.c.bf16 %v1343_v39, %v1343_v39 }
 0xa68   : > { %v2135_v42 = vpop.f32.mrf.mxu1 }
 0xa69   : > { %1583 = vrot.lane.b32.xlu0 %v1349_v41, %s2605_s8 }
 0xa6a   : > { %v1346_v43 = vpop.f32.mrf.mxu1 }
 0xa6c   : > { %v2136_v44 = vpop.f32.mrf.mxu1 }
 0xa6e   : > { %v1453_v45 = vpop.f32.mrf.mxu1 }
 0xa6f   : > { %v1459_v46 = vpack.c.bf16 %v1453_v45, %v1453_v45 }
 0xa70   : > { %v2147_v47 = vpop.f32.mrf.mxu1 }
 0xa71   : > { %1586 = vrot.lane.b32.xlu1 %v1459_v46, %s2602_s13 }
 0xa72   : > { %v1456_v48 = vpop.f32.mrf.mxu1 }
 0xa74   : > { %v2148_v49 = vpop.f32.mrf.mxu1 }
 0xa76   : > { %v1563_v27 = vpop.f32.mrf.mxu1 }
 0xa77   : > { %v1569_v24 = vpack.c.bf16 %v1563_v27, %v1563_v27 }
 0xa78   : > { %v2159_v50 = vpop.f32.mrf.mxu1 }
 0xa79   : > { %1589 = vrot.lane.b32.xlu0 %v1569_v24, %s2601_s16  ;;  %s2515_s16 = scalar_lea.vmem %s2514_s28, 256 }
 0xa7a   : > { %v1566_v51 = vpop.f32.mrf.mxu1  ;;  %p2517_p4 = scmp.lt.s32.totalorder %s2515_s16, %s2509_s29 }
 0xa7c   : > { %v2160_v0 = vpop.f32.mrf.mxu1  ;;  %p2518_p5 = por %p2517_p4, %p2516_p1 }
 0xa7e   : > { %p2519_p10 = pnand %p2518_p5, %p2512_p12 }
 0xacb   : > { %v1578_v56 = vpop.permute.xlu0 %1577 }
 0xacc   : > { %v1599_v62 = vsel %vm1597_vm3, %v1596_v59, %v1578_v56 }
 0xad3   : > { %v1581_v58 = vpop.permute.xlu1 %1580 }
 0xad4   : > { %v1602_v1 = vsel %vm1600_vm4, %v1599_v62, %v1581_v58 }
 0xadb   : > { %v1584_v60 = vpop.permute.xlu0 %1583 }
 0xadc   : > { %v1605_v2 = vsel %vm1603_vm5, %v1602_v1, %v1584_v60 }
 0xae3   : > { %v1587_v63 = vpop.permute.xlu1 %1586 }
 0xae4   : > { %v1608_v61 = vsel %vm1606_vm6, %v1605_v2, %v1587_v63 }
 0xaeb   : > { %v1590_v3 = vpop.permute.xlu0 %1589 }
 0xaec   : > { %v1611_v52 = vsel %vm1609_vm7, %v1608_v61, %v1590_v3 }
 0xaed   : > { %2178 = vmatmul.mubr.bf16.vlgmr.msra.gmra.mxu0 %v1611_v52 }
 0xbad   : > { %v1711_v4 = vpop.f32.mrf.mxu0 }
 0xbae   : > { %1717 = vst [vmem:[%s364_s2] sm:$0xff] %v1711_v4 }
 0xbaf   : > { %v2179_v5 = vpop.f32.mrf.mxu0 }
 0xbb0   : > { %2522 = shalt.err (!%p2519_p10)
}
 0xbb1   : > { %s2523_s13 = scalar_lea.hbm %s3104_s0, 128  ;;  %s2527_s15 = scalar_lea.hbm %s3151_s6, 256 }
 0xbb2   : > { %p2524_p3 = scmp.ne.s32.totalorder %s3104_s0, %s2523_s13  ;;  %p2528_p8 = scmp.lt.s32.totalorder %s3104_s0, %s3151_s6 }
 0xbb3   : > { %p2529_p13 = scmp.lt.s32.totalorder %s2527_s15, %s2523_s13 }
 0xbb4   : > { %p2525_p7 = pnand %p2524_p3, %p3179_p9 }
 0xbb5   : > { %p2530_p0 = por %p2529_p13, %p2528_p8 }
 0xbb6   : > { %p2526_p6 = pneg %p2525_p7 }
 0xbb8   : > { %p2531_p2 = pnand %p2530_p0, %p2526_p6 }
 0xbba   : > { %2534 = shalt.err (!%p2531_p2)
}
 0xbbb   : > { %2201 = dma.vmem_to_hbm [thread:$0]  (%p3179_p9), %s3099_s25, 128, %s3104_s0, %s1719_s10   ;;  %v1714_v22 = vpop.f32.mrf.mxu0 }
 0xbbd   : > { %v2180_v6 = vpop.f32.mrf.mxu0 }
 0xbbe PF: > { %s1744_s11 = sand.u32 1, %s2577_s21   ;;  %p3180_p11 = scmp.ne.s32.totalorder %s3165_s19, 0 }
 0xbbf   : > { %p3181_p12 = scmp.ge.s32.totalorder %s2589_s24, 2  ;;  %s1745_s2 = scalar_lea.sflag [#allocation4], %s1744_s11 }
 0xbc1   : > { %p2224_p1 = pnand %p3181_p12, %p3180_p11 }
 0xbc3   : > { %p2225_p4 = pneg %p2224_p1 }
 0xbc5   : > { %2572 = dma.done.wait (%p2225_p4), %s1745_s2, 128  }
 0xbc6   : > { %2574 = vsyncadd (%p2225_p4), %s1745_s2, 4294967168  ;;  %p24_p9 = scmp.ge.s32.totalorder %s2745_s9, 4   ;;  %s3182_s21 = smov %s2581_s22 }
 0xbc7   : > { %s3183_s22 = smov %s2585_s23  ;;  %s3184_s23 = smov %s2756_s14 }
 0xbc8   : > { %s3185_s24 = smov %s2745_s9  ;;  %26 = sbr.rel (!%p24_p9) target bundleno = 12 (0xc), region = 118 }
 0xbcd   :  { %1750 = vsyncpa [#allocation3], 1 }
 0xbce   :  { %1752 = vsyncpa [#allocation3 + $0x1], 1 }
 0xbcf   :  { %1753 = vsyncpa [#allocation6], 1 }
 0xbd0   :  { %1755 = vsyncpa [#allocation6 + $0x1], 1 }
 0xbd1   :  { %1756 = vsyncpa [#allocation9], 1 }
 0xbd2   :  { %1757 = vsyncpa [#allocation12], 1 }
 0xbd3   :  { %1758 = vsyncpa [#allocation4], 1 }
 0xbd4   :  { %1760 = vsyncpa [#allocation4 + $0x1], 1 }

</bundles_post_ra>
